<compile_context>
chip_gen: v7x
topology: tpu7x:2x2x1
jax: 0.10.0
libtpu: 0.0.40
codegen_flags: <defaults>
</compile_context>

<pallas_src>
import jax
import jax.numpy as jnp
from jax.experimental import pallas as pl
from jax.experimental.pallas import tpu as pltpu

HIDDEN = 32     # logical hidden size (module default was 256; kept small)
VOCAB = 28      # logical vocab size
SEQ_LEN = 8     # number of decode steps fused into one kernel call

LANE = 128
HP = ((HIDDEN + LANE - 1) // LANE) * LANE   # lane-padded hidden size  -> 128
VP = ((VOCAB + LANE - 1) // LANE) * LANE    # lane-padded vocab size   -> 128
VE = ((VOCAB + 7) // 8) * 8                 # sublane-padded embedding rows -> 32

WEIGHT_DTYPE = jnp.bfloat16                 # bf16 MXU operands (v6e/v7x native)


def fused_decoder_kernel(tok_ref,                       # (T,) int32, SMEM (scalar prefetch)
                         emb_ref,                       # (VE, HP) f32
                         h0_ref, c0_ref,                # (1, HP) f32 each
                         wih_ref,                       # (HP, 4*HP)       WEIGHT_DTYPE
                         wrec_ref,                      # (HP, 4*HP + VP)  WEIGHT_DTYPE  [W_hh | W_out]
                         b_ref,                         # (1, 4*HP) f32    (b_ih + b_hh)
                         bout_ref,                      # (1, VP)   f32
                         logits_ref, h_ref, c_ref):     # (T, VP), (1, HP), (1, HP) f32
    T = logits_ref.shape[0]
    G = 4 * HP

    # ---- hoisted input projection (off the serial critical path) ----------
    # Gather all T embedding rows (dynamic sublane slices) + ReLU -> (T, HP).
    x = jnp.concatenate(
        [jnp.maximum(emb_ref[pl.ds(tok_ref[t], 1), :], 0.0) for t in range(T)],
        axis=0)
    # One batched (T,HP)@(HP,4HP) MXU op for the x-dependent gate term + bias.
    gates_x = (jnp.dot(x.astype(wih_ref.dtype), wih_ref[...],
                       preferred_element_type=jnp.float32)
               + b_ref[...])                            # (T, 4*HP) f32

    # ---- serial recurrence: exactly ONE matmul per step --------------------
    h = h0_ref[...]                                     # (1, HP) f32
    c = c0_ref[...]                                     # (1, HP) f32
    logit_rows = []
    for t in range(T):                                  # fully unrolled (T=8, static)
        # h_{t-1} @ [W_hh | W_out]: step-t hidden gate term AND step-(t-1)
        # logits in a single MXU push (deferred-logits trick).
        rec = jnp.dot(h.astype(wrec_ref.dtype), wrec_ref[...],
                      preferred_element_type=jnp.float32)   # (1, 4*HP + VP)
        if t > 0:
            logit_rows.append(rec[:, G:] + bout_ref[...])   # logits for step t-1

        gates = gates_x[t:t + 1, :] + rec[:, :G]
        i_g = jax.nn.sigmoid(gates[:, 0 * HP:1 * HP])
        f_g = jax.nn.sigmoid(gates[:, 1 * HP:2 * HP])
        g_g = jnp.tanh(gates[:, 2 * HP:3 * HP])
        o_g = jax.nn.sigmoid(gates[:, 3 * HP:4 * HP])
        c = f_g * c + i_g * g_g
        h = o_g * jnp.tanh(c)

    # Final step's logits (its deferred matmul never ran inside the loop).
    rec_last = jnp.dot(h.astype(wrec_ref.dtype), wrec_ref[...],
                       preferred_element_type=jnp.float32)
    logit_rows.append(rec_last[:, G:] + bout_ref[...])

    # One dense (T, VP) = (8,128) store + final state writeback.
    logits_ref[...] = jnp.concatenate(logit_rows, axis=0)
    h_ref[...] = h
    c_ref[...] = c


def init_params(key, hidden_size, vocab_size):
    """Logical (unpadded) parameters, PyTorch layout but pre-transposed."""
    ks = jax.random.split(key, 7)
    H, V = hidden_size, vocab_size
    bound = 1.0 / jnp.sqrt(H)
    return {
        # nn.Embedding(vocab_size, hidden_size): N(0, 1)
        "emb": jax.random.normal(ks[0], (V, H), jnp.float32),
        # nn.LSTM(H, H) weights, stored pre-transposed: (H, 4H), gate order i,f,g,o
        "wih_t": jax.random.uniform(ks[1], (H, 4 * H), jnp.float32, -bound, bound),
        "whh_t": jax.random.uniform(ks[2], (H, 4 * H), jnp.float32, -bound, bound),
        "bih": jax.random.uniform(ks[3], (1, 4 * H), jnp.float32, -bound, bound),
        "bhh": jax.random.uniform(ks[4], (1, 4 * H), jnp.float32, -bound, bound),
        # nn.Linear(H, V), stored pre-transposed: (H, V)
        "wout_t": jax.random.uniform(ks[5], (H, V), jnp.float32, -bound, bound),
        "bout": jax.random.uniform(ks[6], (1, V), jnp.float32, -bound, bound),
    }


def prepare_kernel_params(params, weight_dtype=WEIGHT_DTYPE):
    """Zero-pad to lane-aligned shapes, pre-sum LSTM biases, fuse [W_hh|W_out].

    Padding is inert: padded rows/cols/lanes are zero and the padded state
    lanes stay exactly zero through the recurrence.
    """
    H, V = HIDDEN, VOCAB

    emb_p = jnp.zeros((VE, HP), jnp.float32).at[:V, :H].set(params["emb"])

    wih_p = jnp.zeros((HP, 4 * HP), jnp.float32)
    whh_p = jnp.zeros((HP, 4 * HP), jnp.float32)
    b_p = jnp.zeros((1, 4 * HP), jnp.float32)
    b_sum = params["bih"] + params["bhh"]
    for k in range(4):   # keep gate k in lanes [k*HP, k*HP + H)
        wih_p = wih_p.at[:H, k * HP:k * HP + H].set(params["wih_t"][:, k * H:(k + 1) * H])
        whh_p = whh_p.at[:H, k * HP:k * HP + H].set(params["whh_t"][:, k * H:(k + 1) * H])
        b_p = b_p.at[:, k * HP:k * HP + H].set(b_sum[:, k * H:(k + 1) * H])

    wout_p = jnp.zeros((HP, VP), jnp.float32).at[:H, :V].set(params["wout_t"])
    bout_p = jnp.zeros((1, VP), jnp.float32).at[:, :V].set(params["bout"])

    # Deferred-logits fusion: single recurrent weight [W_hh | W_out].
    wrec_p = jnp.concatenate([whh_p, wout_p], axis=1)    # (HP, 4*HP + VP)

    return {
        "emb": emb_p,                                    # f32 (tiny; dynamic row gather)
        "wih": wih_p.astype(weight_dtype),
        "wrec": wrec_p.astype(weight_dtype),
        "b": b_p,                                        # f32
        "bout": bout_p,                                  # f32
    }


def decoder_rnn_decode(tokens, hidden, kparams):
    """Fused decode: applies DecoderRNN.forward once per token in `tokens`,
    carrying the LSTM state inside a single Pallas kernel invocation.

    tokens : (T,) int32 token ids
    hidden : (h, c), each (1, 1, HIDDEN)   (PyTorch LSTM state convention)
    returns (logits (T, VOCAB), (h (1,1,HIDDEN), c (1,1,HIDDEN)))
    """
    T = int(tokens.shape[0])
    h0, c0 = hidden
    h0_p = jnp.zeros((1, HP), jnp.float32).at[:, :HIDDEN].set(h0.reshape(1, HIDDEN))
    c0_p = jnp.zeros((1, HP), jnp.float32).at[:, :HIDDEN].set(c0.reshape(1, HIDDEN))

    const = lambda i, tok: (0, 0)   # single grid step; everything VMEM-resident
    grid_spec = pltpu.PrefetchScalarGridSpec(
        num_scalar_prefetch=1,
        grid=(1,),                  # trivial grid: the T loop runs in-kernel
        in_specs=[
            pl.BlockSpec((VE, HP), const),               # embedding table
            pl.BlockSpec((1, HP), const),                # h0
            pl.BlockSpec((1, HP), const),                # c0
            pl.BlockSpec((HP, 4 * HP), const),           # W_ih^T
            pl.BlockSpec((HP, 4 * HP + VP), const),      # [W_hh^T | W_out^T]
            pl.BlockSpec((1, 4 * HP), const),            # b_ih + b_hh (pre-summed)
            pl.BlockSpec((1, VP), const),                # b_out
        ],
        out_specs=(
            pl.BlockSpec((T, VP), const),                # dense logits block
            pl.BlockSpec((1, HP), const),                # final h
            pl.BlockSpec((1, HP), const),                # final c
        ),
    )

    logits_p, h_p, c_p = pl.pallas_call(
        fused_decoder_kernel,
        out_shape=(
            jax.ShapeDtypeStruct((T, VP), jnp.float32),
            jax.ShapeDtypeStruct((1, HP), jnp.float32),
            jax.ShapeDtypeStruct((1, HP), jnp.float32),
        ),
        grid_spec=grid_spec,
        compiler_params=pltpu.CompilerParams(
            dimension_semantics=("arbitrary",)),
    )(tokens.astype(jnp.int32), kparams["emb"], h0_p, c0_p,
      kparams["wih"], kparams["wrec"], kparams["b"], kparams["bout"])

    logits = logits_p[:, :VOCAB]
    h = h_p[:, :HIDDEN].reshape(1, 1, HIDDEN)
    c = c_p[:, :HIDDEN].reshape(1, 1, HIDDEN)
    return logits, (h, c)


def _reference_decode(tokens, hidden, params):
    """Pure-JAX f32 reference: loop the single-step DecoderRNN.forward."""
    H = HIDDEN
    h, c = hidden
    h = h.reshape(1, H)
    c = c.reshape(1, H)
    logits_all = []
    for tk in list(tokens):
        x = jnp.maximum(params["emb"][tk].reshape(1, H), 0.0)
        gates = (x @ params["wih_t"] + params["bih"]
                 + h @ params["whh_t"] + params["bhh"])
        i_g = jax.nn.sigmoid(gates[:, 0 * H:1 * H])
        f_g = jax.nn.sigmoid(gates[:, 1 * H:2 * H])
        g_g = jnp.tanh(gates[:, 2 * H:3 * H])
        o_g = jax.nn.sigmoid(gates[:, 3 * H:4 * H])
        c = f_g * c + i_g * g_g
        h = o_g * jnp.tanh(c)
        logits_all.append(h @ params["wout_t"] + params["bout"])
    logits = jnp.concatenate(logits_all, axis=0)
    return logits, (h.reshape(1, 1, H), c.reshape(1, 1, H))


if __name__ == "__main__":
    key = jax.random.PRNGKey(0)
    k_params, k_tok = jax.random.split(key)

    params = init_params(k_params, HIDDEN, VOCAB)
    kparams = prepare_kernel_params(params, WEIGHT_DTYPE)

    tokens = jax.random.randint(k_tok, (SEQ_LEN,), 0, VOCAB, dtype=jnp.int32)
    # initHidden(): zeros (1, 1, H) for both h and c
    h0 = jnp.zeros((1, 1, HIDDEN), jnp.float32)
    c0 = jnp.zeros((1, 1, HIDDEN), jnp.float32)

    logits, (h1, c1) = decoder_rnn_decode(tokens, (h0, c0), kparams)
    jax.block_until_ready((logits, h1, c1))

    ref_logits, (ref_h1, ref_c1) = _reference_decode(tokens, (h0, c0), params)

    # bf16 MXU operands vs. f32 reference -> loosened tolerance (per review).
    atol = 5e-2 if WEIGHT_DTYPE == jnp.bfloat16 else 1e-4
    assert jnp.allclose(logits, ref_logits, atol=atol), "logits mismatch"
    assert jnp.allclose(h1, ref_h1, atol=atol), "h mismatch"
    assert jnp.allclose(c1, ref_c1, atol=atol), "c mismatch"

    print("KERNEL_OK")
</pallas_src>

<mosaic_0001>
module attributes {stable_mosaic.version = 11 : i64} {
  func.func @fused_decoder_kernel(%arg0: i32, %arg1: memref<8xi32, #tpu.memory_space<smem>>, %arg2: memref<32x128xf32, #tpu.memory_space<vmem>>, %arg3: memref<1x128xf32, #tpu.memory_space<vmem>>, %arg4: memref<1x128xf32, #tpu.memory_space<vmem>>, %arg5: memref<128x512xbf16, #tpu.memory_space<vmem>>, %arg6: memref<128x640xbf16, #tpu.memory_space<vmem>>, %arg7: memref<1x512xf32, #tpu.memory_space<vmem>>, %arg8: memref<1x128xf32, #tpu.memory_space<vmem>>, %arg9: memref<8x128xf32, #tpu.memory_space<vmem>>, %arg10: memref<1x128xf32, #tpu.memory_space<vmem>>, %arg11: memref<1x128xf32, #tpu.memory_space<vmem>>) attributes {dimension_semantics = [#tpu.dimension_semantics<arbitrary>], iteration_bounds = array<i64: 1>, scalar_prefetch = 1 : i64, scratch_operands = 0 : i64, tpu.core_type = #tpu.core_type<tc>, window_params = [{pipeline_mode = #tpu.pipeline_mode<synchronous>, transform_indices = @transform_0, window_bounds = array<i64: 32, 128>}, {pipeline_mode = #tpu.pipeline_mode<synchronous>, transform_indices = @transform_1, window_bounds = array<i64: 1, 128>}, {pipeline_mode = #tpu.pipeline_mode<synchronous>, transform_indices = @transform_2, window_bounds = array<i64: 1, 128>}, {pipeline_mode = #tpu.pipeline_mode<synchronous>, transform_indices = @transform_3, window_bounds = array<i64: 128, 512>}, {pipeline_mode = #tpu.pipeline_mode<synchronous>, transform_indices = @transform_4, window_bounds = array<i64: 128, 640>}, {pipeline_mode = #tpu.pipeline_mode<synchronous>, transform_indices = @transform_5, window_bounds = array<i64: 1, 512>}, {pipeline_mode = #tpu.pipeline_mode<synchronous>, transform_indices = @transform_6, window_bounds = array<i64: 1, 128>}, {pipeline_mode = #tpu.pipeline_mode<synchronous>, transform_indices = @transform_7, window_bounds = array<i64: 8, 128>}, {pipeline_mode = #tpu.pipeline_mode<synchronous>, transform_indices = @transform_8, window_bounds = array<i64: 1, 128>}, {pipeline_mode = #tpu.pipeline_mode<synchronous>, transform_indices = @transform_9, window_bounds = array<i64: 1, 128>}]} {
    %c0 = arith.constant 0 : index
    %0 = memref.load %arg1[%c0] : memref<8xi32, #tpu.memory_space<smem>>
    %1 = arith.index_cast %0 : i32 to index
    %c0_0 = arith.constant 0 : index
    %2 = vector.load %arg2[%1, %c0_0] : memref<32x128xf32, #tpu.memory_space<vmem>>, vector<1x128xf32>
    %cst = arith.constant 0.000000e+00 : f32
    %3 = vector.broadcast %cst : f32 to vector<1x128xf32>
    %4 = arith.maximumf %2, %3 : vector<1x128xf32>
    %c1 = arith.constant 1 : index
    %5 = memref.load %arg1[%c1] : memref<8xi32, #tpu.memory_space<smem>>
    %6 = arith.index_cast %5 : i32 to index
    %c0_1 = arith.constant 0 : index
    %7 = vector.load %arg2[%6, %c0_1] : memref<32x128xf32, #tpu.memory_space<vmem>>, vector<1x128xf32>
    %cst_2 = arith.constant 0.000000e+00 : f32
    %8 = vector.broadcast %cst_2 : f32 to vector<1x128xf32>
    %9 = arith.maximumf %7, %8 : vector<1x128xf32>
    %c2 = arith.constant 2 : index
    %10 = memref.load %arg1[%c2] : memref<8xi32, #tpu.memory_space<smem>>
    %11 = arith.index_cast %10 : i32 to index
    %c0_3 = arith.constant 0 : index
    %12 = vector.load %arg2[%11, %c0_3] : memref<32x128xf32, #tpu.memory_space<vmem>>, vector<1x128xf32>
    %cst_4 = arith.constant 0.000000e+00 : f32
    %13 = vector.broadcast %cst_4 : f32 to vector<1x128xf32>
    %14 = arith.maximumf %12, %13 : vector<1x128xf32>
    %c3 = arith.constant 3 : index
    %15 = memref.load %arg1[%c3] : memref<8xi32, #tpu.memory_space<smem>>
    %16 = arith.index_cast %15 : i32 to index
    %c0_5 = arith.constant 0 : index
    %17 = vector.load %arg2[%16, %c0_5] : memref<32x128xf32, #tpu.memory_space<vmem>>, vector<1x128xf32>
    %cst_6 = arith.constant 0.000000e+00 : f32
    %18 = vector.broadcast %cst_6 : f32 to vector<1x128xf32>
    %19 = arith.maximumf %17, %18 : vector<1x128xf32>
    %c4 = arith.constant 4 : index
    %20 = memref.load %arg1[%c4] : memref<8xi32, #tpu.memory_space<smem>>
    %21 = arith.index_cast %20 : i32 to index
    %c0_7 = arith.constant 0 : index
    %22 = vector.load %arg2[%21, %c0_7] : memref<32x128xf32, #tpu.memory_space<vmem>>, vector<1x128xf32>
    %cst_8 = arith.constant 0.000000e+00 : f32
    %23 = vector.broadcast %cst_8 : f32 to vector<1x128xf32>
    %24 = arith.maximumf %22, %23 : vector<1x128xf32>
    %c5 = arith.constant 5 : index
    %25 = memref.load %arg1[%c5] : memref<8xi32, #tpu.memory_space<smem>>
    %26 = arith.index_cast %25 : i32 to index
    %c0_9 = arith.constant 0 : index
    %27 = vector.load %arg2[%26, %c0_9] : memref<32x128xf32, #tpu.memory_space<vmem>>, vector<1x128xf32>
    %cst_10 = arith.constant 0.000000e+00 : f32
    %28 = vector.broadcast %cst_10 : f32 to vector<1x128xf32>
    %29 = arith.maximumf %27, %28 : vector<1x128xf32>
    %c6 = arith.constant 6 : index
    %30 = memref.load %arg1[%c6] : memref<8xi32, #tpu.memory_space<smem>>
    %31 = arith.index_cast %30 : i32 to index
    %c0_11 = arith.constant 0 : index
    %32 = vector.load %arg2[%31, %c0_11] : memref<32x128xf32, #tpu.memory_space<vmem>>, vector<1x128xf32>
    %cst_12 = arith.constant 0.000000e+00 : f32
    %33 = vector.broadcast %cst_12 : f32 to vector<1x128xf32>
    %34 = arith.maximumf %32, %33 : vector<1x128xf32>
    %c7 = arith.constant 7 : index
    %35 = memref.load %arg1[%c7] : memref<8xi32, #tpu.memory_space<smem>>
    %36 = arith.index_cast %35 : i32 to index
    %c0_13 = arith.constant 0 : index
    %37 = vector.load %arg2[%36, %c0_13] : memref<32x128xf32, #tpu.memory_space<vmem>>, vector<1x128xf32>
    %cst_14 = arith.constant 0.000000e+00 : f32
    %38 = vector.broadcast %cst_14 : f32 to vector<1x128xf32>
    %39 = arith.maximumf %37, %38 : vector<1x128xf32>
    %40 = tpu.concatenate %4, %9, %14, %19, %24, %29, %34, %39 in 0 : vector<1x128xf32>, vector<1x128xf32>, vector<1x128xf32>, vector<1x128xf32>, vector<1x128xf32>, vector<1x128xf32>, vector<1x128xf32>, vector<1x128xf32> -> vector<8x128xf32>
    %41 = arith.truncf %40 : vector<8x128xf32> to vector<8x128xbf16>
    %c0_15 = arith.constant 0 : index
    %c0_16 = arith.constant 0 : index
    %42 = vector.load %arg5[%c0_15, %c0_16] : memref<128x512xbf16, #tpu.memory_space<vmem>>, vector<128x512xbf16>
    %cst_17 = arith.constant dense<0.000000e+00> : vector<8x512xf32>
    %43 = tpu.matmul %41, %42, %cst_17 {dimension_numbers = #tpu.dot_dimension_numbers<[1], [0], [0], [1], [0, 0, 1, 1], [], []>} : vector<8x128xbf16>, vector<128x512xbf16>, vector<8x512xf32> -> vector<8x512xf32>
    %c0_18 = arith.constant 0 : index
    %c0_19 = arith.constant 0 : index
    %44 = vector.load %arg7[%c0_18, %c0_19] : memref<1x512xf32, #tpu.memory_space<vmem>>, vector<1x512xf32>
    %45 = vector.broadcast %44 : vector<1x512xf32> to vector<8x512xf32>
    %46 = arith.addf %43, %45 : vector<8x512xf32>
    %c0_20 = arith.constant 0 : index
    %c0_21 = arith.constant 0 : index
    %47 = vector.load %arg3[%c0_20, %c0_21] : memref<1x128xf32, #tpu.memory_space<vmem>>, vector<1x128xf32>
    %c0_22 = arith.constant 0 : index
    %c0_23 = arith.constant 0 : index
    %48 = vector.load %arg4[%c0_22, %c0_23] : memref<1x128xf32, #tpu.memory_space<vmem>>, vector<1x128xf32>
    %49 = arith.truncf %47 : vector<1x128xf32> to vector<1x128xbf16>
    %c0_24 = arith.constant 0 : index
    %c0_25 = arith.constant 0 : index
    %50 = vector.load %arg6[%c0_24, %c0_25] : memref<128x640xbf16, #tpu.memory_space<vmem>>, vector<128x640xbf16>
    %cst_26 = arith.constant dense<0.000000e+00> : vector<1x640xf32>
    %51 = tpu.matmul %49, %50, %cst_26 {dimension_numbers = #tpu.dot_dimension_numbers<[1], [0], [0], [1], [0, 0, 1, 1], [], []>} : vector<1x128xbf16>, vector<128x640xbf16>, vector<1x640xf32> -> vector<1x640xf32>
    %52 = vector.extract_strided_slice %46 {offsets = [0, 0], sizes = [1, 512], strides = [1, 1]} : vector<8x512xf32> to vector<1x512xf32>
    %53 = vector.extract_strided_slice %51 {offsets = [0, 0], sizes = [1, 512], strides = [1, 1]} : vector<1x640xf32> to vector<1x512xf32>
    %54 = arith.addf %52, %53 : vector<1x512xf32>
    %55 = vector.extract_strided_slice %54 {offsets = [0, 0], sizes = [1, 128], strides = [1, 1]} : vector<1x512xf32> to vector<1x128xf32>
    %56 = arith.negf %55 : vector<1x128xf32>
    %57 = math.exp %56 : vector<1x128xf32>
    %cst_27 = arith.constant 1.000000e+00 : f32
    %58 = vector.broadcast %cst_27 : f32 to vector<1x128xf32>
    %59 = arith.addf %58, %57 : vector<1x128xf32>
    %60 = arith.divf %58, %59 : vector<1x128xf32>
    %61 = vector.extract_strided_slice %54 {offsets = [0, 128], sizes = [1, 128], strides = [1, 1]} : vector<1x512xf32> to vector<1x128xf32>
    %62 = arith.negf %61 : vector<1x128xf32>
    %63 = math.exp %62 : vector<1x128xf32>
    %cst_28 = arith.constant 1.000000e+00 : f32
    %64 = vector.broadcast %cst_28 : f32 to vector<1x128xf32>
    %65 = arith.addf %64, %63 : vector<1x128xf32>
    %66 = arith.divf %64, %65 : vector<1x128xf32>
    %67 = vector.extract_strided_slice %54 {offsets = [0, 256], sizes = [1, 128], strides = [1, 1]} : vector<1x512xf32> to vector<1x128xf32>
    %68 = math.tanh %67 : vector<1x128xf32>
    %69 = vector.extract_strided_slice %54 {offsets = [0, 384], sizes = [1, 128], strides = [1, 1]} : vector<1x512xf32> to vector<1x128xf32>
    %70 = arith.negf %69 : vector<1x128xf32>
    %71 = math.exp %70 : vector<1x128xf32>
    %cst_29 = arith.constant 1.000000e+00 : f32
    %72 = vector.broadcast %cst_29 : f32 to vector<1x128xf32>
    %73 = arith.addf %72, %71 : vector<1x128xf32>
    %74 = arith.divf %72, %73 : vector<1x128xf32>
    %75 = arith.mulf %66, %48 : vector<1x128xf32>
    %76 = arith.mulf %60, %68 : vector<1x128xf32>
    %77 = arith.addf %75, %76 : vector<1x128xf32>
    %78 = math.tanh %77 : vector<1x128xf32>
    %79 = arith.mulf %74, %78 : vector<1x128xf32>
    %80 = arith.truncf %79 : vector<1x128xf32> to vector<1x128xbf16>
    %c0_30 = arith.constant 0 : index
    %c0_31 = arith.constant 0 : index
    %81 = vector.load %arg6[%c0_30, %c0_31] : memref<128x640xbf16, #tpu.memory_space<vmem>>, vector<128x640xbf16>
    %cst_32 = arith.constant dense<0.000000e+00> : vector<1x640xf32>
    %82 = tpu.matmul %80, %81, %cst_32 {dimension_numbers = #tpu.dot_dimension_numbers<[1], [0], [0], [1], [0, 0, 1, 1], [], []>} : vector<1x128xbf16>, vector<128x640xbf16>, vector<1x640xf32> -> vector<1x640xf32>
    %83 = vector.extract_strided_slice %82 {offsets = [0, 512], sizes = [1, 128], strides = [1, 1]} : vector<1x640xf32> to vector<1x128xf32>
    %c0_33 = arith.constant 0 : index
    %c0_34 = arith.constant 0 : index
    %84 = vector.load %arg8[%c0_33, %c0_34] : memref<1x128xf32, #tpu.memory_space<vmem>>, vector<1x128xf32>
    %85 = arith.addf %83, %84 : vector<1x128xf32>
    %86 = vector.extract_strided_slice %46 {offsets = [1, 0], sizes = [1, 512], strides = [1, 1]} : vector<8x512xf32> to vector<1x512xf32>
    %87 = vector.extract_strided_slice %82 {offsets = [0, 0], sizes = [1, 512], strides = [1, 1]} : vector<1x640xf32> to vector<1x512xf32>
    %88 = arith.addf %86, %87 : vector<1x512xf32>
    %89 = vector.extract_strided_slice %88 {offsets = [0, 0], sizes = [1, 128], strides = [1, 1]} : vector<1x512xf32> to vector<1x128xf32>
    %90 = arith.negf %89 : vector<1x128xf32>
    %91 = math.exp %90 : vector<1x128xf32>
    %cst_35 = arith.constant 1.000000e+00 : f32
    %92 = vector.broadcast %cst_35 : f32 to vector<1x128xf32>
    %93 = arith.addf %92, %91 : vector<1x128xf32>
    %94 = arith.divf %92, %93 : vector<1x128xf32>
    %95 = vector.extract_strided_slice %88 {offsets = [0, 128], sizes = [1, 128], strides = [1, 1]} : vector<1x512xf32> to vector<1x128xf32>
    %96 = arith.negf %95 : vector<1x128xf32>
    %97 = math.exp %96 : vector<1x128xf32>
    %cst_36 = arith.constant 1.000000e+00 : f32
    %98 = vector.broadcast %cst_36 : f32 to vector<1x128xf32>
    %99 = arith.addf %98, %97 : vector<1x128xf32>
    %100 = arith.divf %98, %99 : vector<1x128xf32>
    %101 = vector.extract_strided_slice %88 {offsets = [0, 256], sizes = [1, 128], strides = [1, 1]} : vector<1x512xf32> to vector<1x128xf32>
    %102 = math.tanh %101 : vector<1x128xf32>
    %103 = vector.extract_strided_slice %88 {offsets = [0, 384], sizes = [1, 128], strides = [1, 1]} : vector<1x512xf32> to vector<1x128xf32>
    %104 = arith.negf %103 : vector<1x128xf32>
    %105 = math.exp %104 : vector<1x128xf32>
    %cst_37 = arith.constant 1.000000e+00 : f32
    %106 = vector.broadcast %cst_37 : f32 to vector<1x128xf32>
    %107 = arith.addf %106, %105 : vector<1x128xf32>
    %108 = arith.divf %106, %107 : vector<1x128xf32>
    %109 = arith.mulf %100, %77 : vector<1x128xf32>
    %110 = arith.mulf %94, %102 : vector<1x128xf32>
    %111 = arith.addf %109, %110 : vector<1x128xf32>
    %112 = math.tanh %111 : vector<1x128xf32>
    %113 = arith.mulf %108, %112 : vector<1x128xf32>
    %114 = arith.truncf %113 : vector<1x128xf32> to vector<1x128xbf16>
    %c0_38 = arith.constant 0 : index
    %c0_39 = arith.constant 0 : index
    %115 = vector.load %arg6[%c0_38, %c0_39] : memref<128x640xbf16, #tpu.memory_space<vmem>>, vector<128x640xbf16>
    %cst_40 = arith.constant dense<0.000000e+00> : vector<1x640xf32>
    %116 = tpu.matmul %114, %115, %cst_40 {dimension_numbers = #tpu.dot_dimension_numbers<[1], [0], [0], [1], [0, 0, 1, 1], [], []>} : vector<1x128xbf16>, vector<128x640xbf16>, vector<1x640xf32> -> vector<1x640xf32>
    %117 = vector.extract_strided_slice %116 {offsets = [0, 512], sizes = [1, 128], strides = [1, 1]} : vector<1x640xf32> to vector<1x128xf32>
    %c0_41 = arith.constant 0 : index
    %c0_42 = arith.constant 0 : index
    %118 = vector.load %arg8[%c0_41, %c0_42] : memref<1x128xf32, #tpu.memory_space<vmem>>, vector<1x128xf32>
    %119 = arith.addf %117, %118 : vector<1x128xf32>
    %120 = vector.extract_strided_slice %46 {offsets = [2, 0], sizes = [1, 512], strides = [1, 1]} : vector<8x512xf32> to vector<1x512xf32>
    %121 = vector.extract_strided_slice %116 {offsets = [0, 0], sizes = [1, 512], strides = [1, 1]} : vector<1x640xf32> to vector<1x512xf32>
    %122 = arith.addf %120, %121 : vector<1x512xf32>
    %123 = vector.extract_strided_slice %122 {offsets = [0, 0], sizes = [1, 128], strides = [1, 1]} : vector<1x512xf32> to vector<1x128xf32>
    %124 = arith.negf %123 : vector<1x128xf32>
    %125 = math.exp %124 : vector<1x128xf32>
    %cst_43 = arith.constant 1.000000e+00 : f32
    %126 = vector.broadcast %cst_43 : f32 to vector<1x128xf32>
    %127 = arith.addf %126, %125 : vector<1x128xf32>
    %128 = arith.divf %126, %127 : vector<1x128xf32>
    %129 = vector.extract_strided_slice %122 {offsets = [0, 128], sizes = [1, 128], strides = [1, 1]} : vector<1x512xf32> to vector<1x128xf32>
    %130 = arith.negf %129 : vector<1x128xf32>
    %131 = math.exp %130 : vector<1x128xf32>
    %cst_44 = arith.constant 1.000000e+00 : f32
    %132 = vector.broadcast %cst_44 : f32 to vector<1x128xf32>
    %133 = arith.addf %132, %131 : vector<1x128xf32>
    %134 = arith.divf %132, %133 : vector<1x128xf32>
    %135 = vector.extract_strided_slice %122 {offsets = [0, 256], sizes = [1, 128], strides = [1, 1]} : vector<1x512xf32> to vector<1x128xf32>
    %136 = math.tanh %135 : vector<1x128xf32>
    %137 = vector.extract_strided_slice %122 {offsets = [0, 384], sizes = [1, 128], strides = [1, 1]} : vector<1x512xf32> to vector<1x128xf32>
    %138 = arith.negf %137 : vector<1x128xf32>
    %139 = math.exp %138 : vector<1x128xf32>
    %cst_45 = arith.constant 1.000000e+00 : f32
    %140 = vector.broadcast %cst_45 : f32 to vector<1x128xf32>
    %141 = arith.addf %140, %139 : vector<1x128xf32>
    %142 = arith.divf %140, %141 : vector<1x128xf32>
    %143 = arith.mulf %134, %111 : vector<1x128xf32>
    %144 = arith.mulf %128, %136 : vector<1x128xf32>
    %145 = arith.addf %143, %144 : vector<1x128xf32>
    %146 = math.tanh %145 : vector<1x128xf32>
    %147 = arith.mulf %142, %146 : vector<1x128xf32>
    %148 = arith.truncf %147 : vector<1x128xf32> to vector<1x128xbf16>
    %c0_46 = arith.constant 0 : index
    %c0_47 = arith.constant 0 : index
    %149 = vector.load %arg6[%c0_46, %c0_47] : memref<128x640xbf16, #tpu.memory_space<vmem>>, vector<128x640xbf16>
    %cst_48 = arith.constant dense<0.000000e+00> : vector<1x640xf32>
    %150 = tpu.matmul %148, %149, %cst_48 {dimension_numbers = #tpu.dot_dimension_numbers<[1], [0], [0], [1], [0, 0, 1, 1], [], []>} : vector<1x128xbf16>, vector<128x640xbf16>, vector<1x640xf32> -> vector<1x640xf32>
    %151 = vector.extract_strided_slice %150 {offsets = [0, 512], sizes = [1, 128], strides = [1, 1]} : vector<1x640xf32> to vector<1x128xf32>
    %c0_49 = arith.constant 0 : index
    %c0_50 = arith.constant 0 : index
    %152 = vector.load %arg8[%c0_49, %c0_50] : memref<1x128xf32, #tpu.memory_space<vmem>>, vector<1x128xf32>
    %153 = arith.addf %151, %152 : vector<1x128xf32>
    %154 = vector.extract_strided_slice %46 {offsets = [3, 0], sizes = [1, 512], strides = [1, 1]} : vector<8x512xf32> to vector<1x512xf32>
    %155 = vector.extract_strided_slice %150 {offsets = [0, 0], sizes = [1, 512], strides = [1, 1]} : vector<1x640xf32> to vector<1x512xf32>
    %156 = arith.addf %154, %155 : vector<1x512xf32>
    %157 = vector.extract_strided_slice %156 {offsets = [0, 0], sizes = [1, 128], strides = [1, 1]} : vector<1x512xf32> to vector<1x128xf32>
    %158 = arith.negf %157 : vector<1x128xf32>
    %159 = math.exp %158 : vector<1x128xf32>
    %cst_51 = arith.constant 1.000000e+00 : f32
    %160 = vector.broadcast %cst_51 : f32 to vector<1x128xf32>
    %161 = arith.addf %160, %159 : vector<1x128xf32>
    %162 = arith.divf %160, %161 : vector<1x128xf32>
    %163 = vector.extract_strided_slice %156 {offsets = [0, 128], sizes = [1, 128], strides = [1, 1]} : vector<1x512xf32> to vector<1x128xf32>
    %164 = arith.negf %163 : vector<1x128xf32>
    %165 = math.exp %164 : vector<1x128xf32>
    %cst_52 = arith.constant 1.000000e+00 : f32
    %166 = vector.broadcast %cst_52 : f32 to vector<1x128xf32>
    %167 = arith.addf %166, %165 : vector<1x128xf32>
    %168 = arith.divf %166, %167 : vector<1x128xf32>
    %169 = vector.extract_strided_slice %156 {offsets = [0, 256], sizes = [1, 128], strides = [1, 1]} : vector<1x512xf32> to vector<1x128xf32>
    %170 = math.tanh %169 : vector<1x128xf32>
    %171 = vector.extract_strided_slice %156 {offsets = [0, 384], sizes = [1, 128], strides = [1, 1]} : vector<1x512xf32> to vector<1x128xf32>
    %172 = arith.negf %171 : vector<1x128xf32>
    %173 = math.exp %172 : vector<1x128xf32>
    %cst_53 = arith.constant 1.000000e+00 : f32
    %174 = vector.broadcast %cst_53 : f32 to vector<1x128xf32>
    %175 = arith.addf %174, %173 : vector<1x128xf32>
    %176 = arith.divf %174, %175 : vector<1x128xf32>
    %177 = arith.mulf %168, %145 : vector<1x128xf32>
    %178 = arith.mulf %162, %170 : vector<1x128xf32>
    %179 = arith.addf %177, %178 : vector<1x128xf32>
    %180 = math.tanh %179 : vector<1x128xf32>
    %181 = arith.mulf %176, %180 : vector<1x128xf32>
    %182 = arith.truncf %181 : vector<1x128xf32> to vector<1x128xbf16>
    %c0_54 = arith.constant 0 : index
    %c0_55 = arith.constant 0 : index
    %183 = vector.load %arg6[%c0_54, %c0_55] : memref<128x640xbf16, #tpu.memory_space<vmem>>, vector<128x640xbf16>
    %cst_56 = arith.constant dense<0.000000e+00> : vector<1x640xf32>
    %184 = tpu.matmul %182, %183, %cst_56 {dimension_numbers = #tpu.dot_dimension_numbers<[1], [0], [0], [1], [0, 0, 1, 1], [], []>} : vector<1x128xbf16>, vector<128x640xbf16>, vector<1x640xf32> -> vector<1x640xf32>
    %185 = vector.extract_strided_slice %184 {offsets = [0, 512], sizes = [1, 128], strides = [1, 1]} : vector<1x640xf32> to vector<1x128xf32>
    %c0_57 = arith.constant 0 : index
    %c0_58 = arith.constant 0 : index
    %186 = vector.load %arg8[%c0_57, %c0_58] : memref<1x128xf32, #tpu.memory_space<vmem>>, vector<1x128xf32>
    %187 = arith.addf %185, %186 : vector<1x128xf32>
    %188 = vector.extract_strided_slice %46 {offsets = [4, 0], sizes = [1, 512], strides = [1, 1]} : vector<8x512xf32> to vector<1x512xf32>
    %189 = vector.extract_strided_slice %184 {offsets = [0, 0], sizes = [1, 512], strides = [1, 1]} : vector<1x640xf32> to vector<1x512xf32>
    %190 = arith.addf %188, %189 : vector<1x512xf32>
    %191 = vector.extract_strided_slice %190 {offsets = [0, 0], sizes = [1, 128], strides = [1, 1]} : vector<1x512xf32> to vector<1x128xf32>
    %192 = arith.negf %191 : vector<1x128xf32>
    %193 = math.exp %192 : vector<1x128xf32>
    %cst_59 = arith.constant 1.000000e+00 : f32
    %194 = vector.broadcast %cst_59 : f32 to vector<1x128xf32>
    %195 = arith.addf %194, %193 : vector<1x128xf32>
    %196 = arith.divf %194, %195 : vector<1x128xf32>
    %197 = vector.extract_strided_slice %190 {offsets = [0, 128], sizes = [1, 128], strides = [1, 1]} : vector<1x512xf32> to vector<1x128xf32>
    %198 = arith.negf %197 : vector<1x128xf32>
    %199 = math.exp %198 : vector<1x128xf32>
    %cst_60 = arith.constant 1.000000e+00 : f32
    %200 = vector.broadcast %cst_60 : f32 to vector<1x128xf32>
    %201 = arith.addf %200, %199 : vector<1x128xf32>
    %202 = arith.divf %200, %201 : vector<1x128xf32>
    %203 = vector.extract_strided_slice %190 {offsets = [0, 256], sizes = [1, 128], strides = [1, 1]} : vector<1x512xf32> to vector<1x128xf32>
    %204 = math.tanh %203 : vector<1x128xf32>
    %205 = vector.extract_strided_slice %190 {offsets = [0, 384], sizes = [1, 128], strides = [1, 1]} : vector<1x512xf32> to vector<1x128xf32>
    %206 = arith.negf %205 : vector<1x128xf32>
    %207 = math.exp %206 : vector<1x128xf32>
    %cst_61 = arith.constant 1.000000e+00 : f32
    %208 = vector.broadcast %cst_61 : f32 to vector<1x128xf32>
    %209 = arith.addf %208, %207 : vector<1x128xf32>
    %210 = arith.divf %208, %209 : vector<1x128xf32>
    %211 = arith.mulf %202, %179 : vector<1x128xf32>
    %212 = arith.mulf %196, %204 : vector<1x128xf32>
    %213 = arith.addf %211, %212 : vector<1x128xf32>
    %214 = math.tanh %213 : vector<1x128xf32>
    %215 = arith.mulf %210, %214 : vector<1x128xf32>
    %216 = arith.truncf %215 : vector<1x128xf32> to vector<1x128xbf16>
    %c0_62 = arith.constant 0 : index
    %c0_63 = arith.constant 0 : index
    %217 = vector.load %arg6[%c0_62, %c0_63] : memref<128x640xbf16, #tpu.memory_space<vmem>>, vector<128x640xbf16>
    %cst_64 = arith.constant dense<0.000000e+00> : vector<1x640xf32>
    %218 = tpu.matmul %216, %217, %cst_64 {dimension_numbers = #tpu.dot_dimension_numbers<[1], [0], [0], [1], [0, 0, 1, 1], [], []>} : vector<1x128xbf16>, vector<128x640xbf16>, vector<1x640xf32> -> vector<1x640xf32>
    %219 = vector.extract_strided_slice %218 {offsets = [0, 512], sizes = [1, 128], strides = [1, 1]} : vector<1x640xf32> to vector<1x128xf32>
    %c0_65 = arith.constant 0 : index
    %c0_66 = arith.constant 0 : index
    %220 = vector.load %arg8[%c0_65, %c0_66] : memref<1x128xf32, #tpu.memory_space<vmem>>, vector<1x128xf32>
    %221 = arith.addf %219, %220 : vector<1x128xf32>
    %222 = vector.extract_strided_slice %46 {offsets = [5, 0], sizes = [1, 512], strides = [1, 1]} : vector<8x512xf32> to vector<1x512xf32>
    %223 = vector.extract_strided_slice %218 {offsets = [0, 0], sizes = [1, 512], strides = [1, 1]} : vector<1x640xf32> to vector<1x512xf32>
    %224 = arith.addf %222, %223 : vector<1x512xf32>
    %225 = vector.extract_strided_slice %224 {offsets = [0, 0], sizes = [1, 128], strides = [1, 1]} : vector<1x512xf32> to vector<1x128xf32>
    %226 = arith.negf %225 : vector<1x128xf32>
    %227 = math.exp %226 : vector<1x128xf32>
    %cst_67 = arith.constant 1.000000e+00 : f32
    %228 = vector.broadcast %cst_67 : f32 to vector<1x128xf32>
    %229 = arith.addf %228, %227 : vector<1x128xf32>
    %230 = arith.divf %228, %229 : vector<1x128xf32>
    %231 = vector.extract_strided_slice %224 {offsets = [0, 128], sizes = [1, 128], strides = [1, 1]} : vector<1x512xf32> to vector<1x128xf32>
    %232 = arith.negf %231 : vector<1x128xf32>
    %233 = math.exp %232 : vector<1x128xf32>
    %cst_68 = arith.constant 1.000000e+00 : f32
    %234 = vector.broadcast %cst_68 : f32 to vector<1x128xf32>
    %235 = arith.addf %234, %233 : vector<1x128xf32>
    %236 = arith.divf %234, %235 : vector<1x128xf32>
    %237 = vector.extract_strided_slice %224 {offsets = [0, 256], sizes = [1, 128], strides = [1, 1]} : vector<1x512xf32> to vector<1x128xf32>
    %238 = math.tanh %237 : vector<1x128xf32>
    %239 = vector.extract_strided_slice %224 {offsets = [0, 384], sizes = [1, 128], strides = [1, 1]} : vector<1x512xf32> to vector<1x128xf32>
    %240 = arith.negf %239 : vector<1x128xf32>
    %241 = math.exp %240 : vector<1x128xf32>
    %cst_69 = arith.constant 1.000000e+00 : f32
    %242 = vector.broadcast %cst_69 : f32 to vector<1x128xf32>
    %243 = arith.addf %242, %241 : vector<1x128xf32>
    %244 = arith.divf %242, %243 : vector<1x128xf32>
    %245 = arith.mulf %236, %213 : vector<1x128xf32>
    %246 = arith.mulf %230, %238 : vector<1x128xf32>
    %247 = arith.addf %245, %246 : vector<1x128xf32>
    %248 = math.tanh %247 : vector<1x128xf32>
    %249 = arith.mulf %244, %248 : vector<1x128xf32>
    %250 = arith.truncf %249 : vector<1x128xf32> to vector<1x128xbf16>
    %c0_70 = arith.constant 0 : index
    %c0_71 = arith.constant 0 : index
    %251 = vector.load %arg6[%c0_70, %c0_71] : memref<128x640xbf16, #tpu.memory_space<vmem>>, vector<128x640xbf16>
    %cst_72 = arith.constant dense<0.000000e+00> : vector<1x640xf32>
    %252 = tpu.matmul %250, %251, %cst_72 {dimension_numbers = #tpu.dot_dimension_numbers<[1], [0], [0], [1], [0, 0, 1, 1], [], []>} : vector<1x128xbf16>, vector<128x640xbf16>, vector<1x640xf32> -> vector<1x640xf32>
    %253 = vector.extract_strided_slice %252 {offsets = [0, 512], sizes = [1, 128], strides = [1, 1]} : vector<1x640xf32> to vector<1x128xf32>
    %c0_73 = arith.constant 0 : index
    %c0_74 = arith.constant 0 : index
    %254 = vector.load %arg8[%c0_73, %c0_74] : memref<1x128xf32, #tpu.memory_space<vmem>>, vector<1x128xf32>
    %255 = arith.addf %253, %254 : vector<1x128xf32>
    %256 = vector.extract_strided_slice %46 {offsets = [6, 0], sizes = [1, 512], strides = [1, 1]} : vector<8x512xf32> to vector<1x512xf32>
    %257 = vector.extract_strided_slice %252 {offsets = [0, 0], sizes = [1, 512], strides = [1, 1]} : vector<1x640xf32> to vector<1x512xf32>
    %258 = arith.addf %256, %257 : vector<1x512xf32>
    %259 = vector.extract_strided_slice %258 {offsets = [0, 0], sizes = [1, 128], strides = [1, 1]} : vector<1x512xf32> to vector<1x128xf32>
    %260 = arith.negf %259 : vector<1x128xf32>
    %261 = math.exp %260 : vector<1x128xf32>
    %cst_75 = arith.constant 1.000000e+00 : f32
    %262 = vector.broadcast %cst_75 : f32 to vector<1x128xf32>
    %263 = arith.addf %262, %261 : vector<1x128xf32>
    %264 = arith.divf %262, %263 : vector<1x128xf32>
    %265 = vector.extract_strided_slice %258 {offsets = [0, 128], sizes = [1, 128], strides = [1, 1]} : vector<1x512xf32> to vector<1x128xf32>
    %266 = arith.negf %265 : vector<1x128xf32>
    %267 = math.exp %266 : vector<1x128xf32>
    %cst_76 = arith.constant 1.000000e+00 : f32
    %268 = vector.broadcast %cst_76 : f32 to vector<1x128xf32>
    %269 = arith.addf %268, %267 : vector<1x128xf32>
    %270 = arith.divf %268, %269 : vector<1x128xf32>
    %271 = vector.extract_strided_slice %258 {offsets = [0, 256], sizes = [1, 128], strides = [1, 1]} : vector<1x512xf32> to vector<1x128xf32>
    %272 = math.tanh %271 : vector<1x128xf32>
    %273 = vector.extract_strided_slice %258 {offsets = [0, 384], sizes = [1, 128], strides = [1, 1]} : vector<1x512xf32> to vector<1x128xf32>
    %274 = arith.negf %273 : vector<1x128xf32>
    %275 = math.exp %274 : vector<1x128xf32>
    %cst_77 = arith.constant 1.000000e+00 : f32
    %276 = vector.broadcast %cst_77 : f32 to vector<1x128xf32>
    %277 = arith.addf %276, %275 : vector<1x128xf32>
    %278 = arith.divf %276, %277 : vector<1x128xf32>
    %279 = arith.mulf %270, %247 : vector<1x128xf32>
    %280 = arith.mulf %264, %272 : vector<1x128xf32>
    %281 = arith.addf %279, %280 : vector<1x128xf32>
    %282 = math.tanh %281 : vector<1x128xf32>
    %283 = arith.mulf %278, %282 : vector<1x128xf32>
    %284 = arith.truncf %283 : vector<1x128xf32> to vector<1x128xbf16>
    %c0_78 = arith.constant 0 : index
    %c0_79 = arith.constant 0 : index
    %285 = vector.load %arg6[%c0_78, %c0_79] : memref<128x640xbf16, #tpu.memory_space<vmem>>, vector<128x640xbf16>
    %cst_80 = arith.constant dense<0.000000e+00> : vector<1x640xf32>
    %286 = tpu.matmul %284, %285, %cst_80 {dimension_numbers = #tpu.dot_dimension_numbers<[1], [0], [0], [1], [0, 0, 1, 1], [], []>} : vector<1x128xbf16>, vector<128x640xbf16>, vector<1x640xf32> -> vector<1x640xf32>
    %287 = vector.extract_strided_slice %286 {offsets = [0, 512], sizes = [1, 128], strides = [1, 1]} : vector<1x640xf32> to vector<1x128xf32>
    %c0_81 = arith.constant 0 : index
    %c0_82 = arith.constant 0 : index
    %288 = vector.load %arg8[%c0_81, %c0_82] : memref<1x128xf32, #tpu.memory_space<vmem>>, vector<1x128xf32>
    %289 = arith.addf %287, %288 : vector<1x128xf32>
    %290 = vector.extract_strided_slice %46 {offsets = [7, 0], sizes = [1, 512], strides = [1, 1]} : vector<8x512xf32> to vector<1x512xf32>
    %291 = vector.extract_strided_slice %286 {offsets = [0, 0], sizes = [1, 512], strides = [1, 1]} : vector<1x640xf32> to vector<1x512xf32>
    %292 = arith.addf %290, %291 : vector<1x512xf32>
    %293 = vector.extract_strided_slice %292 {offsets = [0, 0], sizes = [1, 128], strides = [1, 1]} : vector<1x512xf32> to vector<1x128xf32>
    %294 = arith.negf %293 : vector<1x128xf32>
    %295 = math.exp %294 : vector<1x128xf32>
    %cst_83 = arith.constant 1.000000e+00 : f32
    %296 = vector.broadcast %cst_83 : f32 to vector<1x128xf32>
    %297 = arith.addf %296, %295 : vector<1x128xf32>
    %298 = arith.divf %296, %297 : vector<1x128xf32>
    %299 = vector.extract_strided_slice %292 {offsets = [0, 128], sizes = [1, 128], strides = [1, 1]} : vector<1x512xf32> to vector<1x128xf32>
    %300 = arith.negf %299 : vector<1x128xf32>
    %301 = math.exp %300 : vector<1x128xf32>
    %cst_84 = arith.constant 1.000000e+00 : f32
    %302 = vector.broadcast %cst_84 : f32 to vector<1x128xf32>
    %303 = arith.addf %302, %301 : vector<1x128xf32>
    %304 = arith.divf %302, %303 : vector<1x128xf32>
    %305 = vector.extract_strided_slice %292 {offsets = [0, 256], sizes = [1, 128], strides = [1, 1]} : vector<1x512xf32> to vector<1x128xf32>
    %306 = math.tanh %305 : vector<1x128xf32>
    %307 = vector.extract_strided_slice %292 {offsets = [0, 384], sizes = [1, 128], strides = [1, 1]} : vector<1x512xf32> to vector<1x128xf32>
    %308 = arith.negf %307 : vector<1x128xf32>
    %309 = math.exp %308 : vector<1x128xf32>
    %cst_85 = arith.constant 1.000000e+00 : f32
    %310 = vector.broadcast %cst_85 : f32 to vector<1x128xf32>
    %311 = arith.addf %310, %309 : vector<1x128xf32>
    %312 = arith.divf %310, %311 : vector<1x128xf32>
    %313 = arith.mulf %304, %281 : vector<1x128xf32>
    %314 = arith.mulf %298, %306 : vector<1x128xf32>
    %315 = arith.addf %313, %314 : vector<1x128xf32>
    %316 = math.tanh %315 : vector<1x128xf32>
    %317 = arith.mulf %312, %316 : vector<1x128xf32>
    %318 = arith.truncf %317 : vector<1x128xf32> to vector<1x128xbf16>
    %c0_86 = arith.constant 0 : index
    %c0_87 = arith.constant 0 : index
    %319 = vector.load %arg6[%c0_86, %c0_87] : memref<128x640xbf16, #tpu.memory_space<vmem>>, vector<128x640xbf16>
    %cst_88 = arith.constant dense<0.000000e+00> : vector<1x640xf32>
    %320 = tpu.matmul %318, %319, %cst_88 {dimension_numbers = #tpu.dot_dimension_numbers<[1], [0], [0], [1], [0, 0, 1, 1], [], []>} : vector<1x128xbf16>, vector<128x640xbf16>, vector<1x640xf32> -> vector<1x640xf32>
    %321 = vector.extract_strided_slice %320 {offsets = [0, 512], sizes = [1, 128], strides = [1, 1]} : vector<1x640xf32> to vector<1x128xf32>
    %c0_89 = arith.constant 0 : index
    %c0_90 = arith.constant 0 : index
    %322 = vector.load %arg8[%c0_89, %c0_90] : memref<1x128xf32, #tpu.memory_space<vmem>>, vector<1x128xf32>
    %323 = arith.addf %321, %322 : vector<1x128xf32>
    %324 = tpu.concatenate %85, %119, %153, %187, %221, %255, %289, %323 in 0 : vector<1x128xf32>, vector<1x128xf32>, vector<1x128xf32>, vector<1x128xf32>, vector<1x128xf32>, vector<1x128xf32>, vector<1x128xf32>, vector<1x128xf32> -> vector<8x128xf32>
    %c0_91 = arith.constant 0 : index
    %c0_92 = arith.constant 0 : index
    %325 = vector.load %arg9[%c0_91, %c0_92] : memref<8x128xf32, #tpu.memory_space<vmem>>, vector<8x128xf32>
    tpu.vector_store %arg9[%c0_91, %c0_92], %324 {strides = array<i32>} : memref<8x128xf32, #tpu.memory_space<vmem>>, vector<8x128xf32>,
    %c0_93 = arith.constant 0 : index
    %c0_94 = arith.constant 0 : index
    %326 = vector.load %arg10[%c0_93, %c0_94] : memref<1x128xf32, #tpu.memory_space<vmem>>, vector<1x128xf32>
    tpu.vector_store %arg10[%c0_93, %c0_94], %317 {strides = array<i32>} : memref<1x128xf32, #tpu.memory_space<vmem>>, vector<1x128xf32>,
    %c0_95 = arith.constant 0 : index
    %c0_96 = arith.constant 0 : index
    %327 = vector.load %arg11[%c0_95, %c0_96] : memref<1x128xf32, #tpu.memory_space<vmem>>, vector<1x128xf32>
    tpu.vector_store %arg11[%c0_95, %c0_96], %315 {strides = array<i32>} : memref<1x128xf32, #tpu.memory_space<vmem>>, vector<1x128xf32>,
    return
  }
  func.func @transform_0(%arg0: i32, %arg1: memref<8xi32, #tpu.memory_space<smem>>) -> (i32, i32) {
    %c0_i32 = arith.constant 0 : i32
    %c0_i32_0 = arith.constant 0 : i32
    %c0_i32_1 = arith.constant 0 : i32
    return %c0_i32, %c0_i32_0 : i32, i32
  }
  func.func @transform_1(%arg0: i32, %arg1: memref<8xi32, #tpu.memory_space<smem>>) -> (i32, i32) {
    %c0_i32 = arith.constant 0 : i32
    %c0_i32_0 = arith.constant 0 : i32
    %c0_i32_1 = arith.constant 0 : i32
    return %c0_i32, %c0_i32_0 : i32, i32
  }
  func.func @transform_2(%arg0: i32, %arg1: memref<8xi32, #tpu.memory_space<smem>>) -> (i32, i32) {
    %c0_i32 = arith.constant 0 : i32
    %c0_i32_0 = arith.constant 0 : i32
    %c0_i32_1 = arith.constant 0 : i32
    return %c0_i32, %c0_i32_0 : i32, i32
  }
  func.func @transform_3(%arg0: i32, %arg1: memref<8xi32, #tpu.memory_space<smem>>) -> (i32, i32) {
    %c0_i32 = arith.constant 0 : i32
    %c0_i32_0 = arith.constant 0 : i32
    %c0_i32_1 = arith.constant 0 : i32
    return %c0_i32, %c0_i32_0 : i32, i32
  }
  func.func @transform_4(%arg0: i32, %arg1: memref<8xi32, #tpu.memory_space<smem>>) -> (i32, i32) {
    %c0_i32 = arith.constant 0 : i32
    %c0_i32_0 = arith.constant 0 : i32
    %c0_i32_1 = arith.constant 0 : i32
    return %c0_i32, %c0_i32_0 : i32, i32
  }
  func.func @transform_5(%arg0: i32, %arg1: memref<8xi32, #tpu.memory_space<smem>>) -> (i32, i32) {
    %c0_i32 = arith.constant 0 : i32
    %c0_i32_0 = arith.constant 0 : i32
    %c0_i32_1 = arith.constant 0 : i32
    return %c0_i32, %c0_i32_0 : i32, i32
  }
  func.func @transform_6(%arg0: i32, %arg1: memref<8xi32, #tpu.memory_space<smem>>) -> (i32, i32) {
    %c0_i32 = arith.constant 0 : i32
    %c0_i32_0 = arith.constant 0 : i32
    %c0_i32_1 = arith.constant 0 : i32
    return %c0_i32, %c0_i32_0 : i32, i32
  }
  func.func @transform_7(%arg0: i32, %arg1: memref<8xi32, #tpu.memory_space<smem>>) -> (i32, i32) {
    %c0_i32 = arith.constant 0 : i32
    %c0_i32_0 = arith.constant 0 : i32
    %c0_i32_1 = arith.constant 0 : i32
    return %c0_i32, %c0_i32_0 : i32, i32
  }
  func.func @transform_8(%arg0: i32, %arg1: memref<8xi32, #tpu.memory_space<smem>>) -> (i32, i32) {
    %c0_i32 = arith.constant 0 : i32
    %c0_i32_0 = arith.constant 0 : i32
    %c0_i32_1 = arith.constant 0 : i32
    return %c0_i32, %c0_i32_0 : i32, i32
  }
  func.func @transform_9(%arg0: i32, %arg1: memref<8xi32, #tpu.memory_space<smem>>) -> (i32, i32) {
    %c0_i32 = arith.constant 0 : i32
    %c0_i32_0 = arith.constant 0 : i32
    %c0_i32_1 = arith.constant 0 : i32
    return %c0_i32, %c0_i32_0 : i32, i32
  }
}

</mosaic_0001>

<bundles_post_ra>
// kernel: tpu_custom_call.1
= control target key start
LH: loop header
LB: loop body
LE: loop exit
PB: predicated region body
PF: predicated region fallthrough
CT: control target
= control target key end

     0   :  { %s3789_s0 = inlined_call_operand.hbm [shape: s32[8], index: 0, kind: input, shape index: {}]   ;;  %s3790_s1 = inlined_call_operand.hbm [shape: f32[32,128], index: 1, kind: input, shape index: {}]   ;;  %s3791_s2 = inlined_call_operand.vmem [shape: f32[1,128], index: 2, kind: input, shape index: {}]   ;;  %s3792_s3 = inlined_call_operand.vmem [shape: f32[1,128], index: 3, kind: input, shape index: {}]   ;;  %s3793_s4 = inlined_call_operand.hbm [shape: bf16[128,512], index: 4, kind: input, shape index: {}]   ;;  %s3794_s5 = inlined_call_operand.hbm [shape: bf16[128,640], index: 5, kind: input, shape index: {}]   ;;  %s3795_s6 = inlined_call_operand.vmem [shape: f32[1,512], index: 6, kind: input, shape index: {}]   ;;  %s3796_s7 = inlined_call_operand.vmem [shape: f32[1,128], index: 7, kind: input, shape index: {}]   ;;  %s3797_s8 = inlined_call_operand.hbm [shape: f32[8,128], index: 8, kind: output, shape index: {0}]   ;;  %s3798_s9 = inlined_call_operand.hbm [shape: f32[1,128], index: 9, kind: output, shape index: {1}]   ;;  %s3799_s10 = inlined_call_operand.hbm [shape: f32[1,128], index: 10, kind: output, shape index: {2}]  }
   0x1   :  { %s2757_s15 = scalar_lea.hbm %s3789_s0, 16 }
   0x2   :  { %p2758_p0 = scmp.ne.s32.totalorder %s3789_s0, %s2757_s15  ;;  %p2761_p1 = scmp.lt.u32.totalorder %s2757_s15, %s3789_s0 }
   0x4   :  { %p2763_p2 = pnand %p2761_p1, %p2758_p0 }
   0x6   :  { %2766 = shalt.err (!%p2763_p2)  }
   0x7   :  { %s2909_s20 = smov [#allocation3]  }
   0x8   :  { %17 = dma.hbm_to_smem %s3789_s0, 16, %s2909_s20, [#allocation2] }
   0x9   :  { %2899 = dma.done.wait [#allocation2], 16 }
   0xa   :  { %2900 = vsyncadd [#allocation2], 4294967280 }
   0xb   :  { %19 = sfence }
   0xc   :  { %20 = vsyncpa [#allocation5], 0 }
   0xd   :  { %21 = vsyncpa [#allocation8], 0 }
   0xe   :  { %22 = vsyncpa [#allocation6], 0 }
   0xf   :  { %23 = vsyncpa [#allocation12], 0  ;;  %s2910_s23 = smov [#allocation7]   ;;  %s2767_s27 = scalar_lea.hbm %s3793_s4, 4096 }
  0x10   :  { %s45_s24 = sshll.u32 %s2910_s23, 4  ;;  %p2768_p3 = scmp.ne.s32.totalorder %s3793_s4, %s2767_s27  ;;  %s46_s24 = int_to_ptr.vmem [resolvable:$true] %s45_s24 }
  0x11   :  { %p2771_p4 = scmp.lt.u32.totalorder %s2767_s27, %s3793_s4 }
  0x13   :  { %p2773_p5 = pnand %p2771_p4, %p2768_p3 }
  0x15   :  { %2776 = shalt.err (!%p2773_p5)
}
  0x16   :  { %s2777_s11 = scalar_lea.vmem %s46_s24, 4096  ;;  %p2782_p7 = scmp.lt.s32.totalorder %s46_s24, %s46_s24 }
  0x17   :  { %p2778_p6 = scmp.ne.s32.totalorder %s46_s24, %s2777_s11  ;;  %p2783_p8 = scmp.lt.s32.totalorder %s2777_s11, %s2777_s11 }
  0x19   :  { %p2784_p9 = por %p2783_p8, %p2782_p7 }
  0x1b   :  { %p2785_p10 = pnand %p2784_p9, %p2778_p6 }
  0x1d   :  { %2788 = shalt.err (!%p2785_p10)
}
  0x1e   :  { %s2911_s12 = smov 256   ;;  %s2912_s13 = smov 16  }
  0x1f   :  { %51 = dma.hbm_to_vmem [thread:$0]  %s3793_s4, 4096, %s46_s24, [#allocation8], %s2911_s12, %s2911_s12, %s2912_s13  }
  0x20   :  { %s2913_s16 = smov [#allocation4]   ;;  %s2789_s20 = scalar_lea.hbm %s3790_s1, 512 }
  0x21   :  { %s29_s17 = sshll.u32 %s2913_s16, 4  ;;  %p2790_p11 = scmp.ne.s32.totalorder %s3790_s1, %s2789_s20  ;;  %s30_s17 = int_to_ptr.vmem [resolvable:$true] %s29_s17 }
  0x22   :  { %p2793_p12 = scmp.lt.u32.totalorder %s2789_s20, %s3790_s1 }
  0x24   :  { %p2795_p13 = pnand %p2793_p12, %p2790_p11 }
  0x26   :  { %2798 = shalt.err (!%p2795_p13)
}
  0x27   :  { %s2799_s26 = scalar_lea.vmem %s30_s17, 512  ;;  %p2804_p1 = scmp.lt.s32.totalorder %s30_s17, %s30_s17 }
  0x28   :  { %p2800_p0 = scmp.ne.s32.totalorder %s30_s17, %s2799_s26  ;;  %p2805_p2 = scmp.lt.s32.totalorder %s2799_s26, %s2799_s26 }
  0x2a   :  { %p2806_p3 = por %p2805_p2, %p2804_p1 }
  0x2c   :  { %p2807_p4 = pnand %p2806_p3, %p2800_p0 }
  0x2e   :  { %2810 = shalt.err (!%p2807_p4)
}
  0x2f   :  { %s2914_s4 = smov 128   ;;  %s2915_s24 = smov 8  }
  0x30   :  { %35 = dma.hbm_to_vmem [thread:$0]  %s3790_s1, 512, %s30_s17, [#allocation5], %s2914_s4, %s2914_s4, %s2915_s24  }
  0x31   :  { %s2916_s29 = smov [#allocation9]   ;;  %s2811_s12 = scalar_lea.hbm %s3794_s5, 5120 }
  0x32   :  { %s57_s30 = sshll.u32 %s2916_s29, 4  ;;  %p2812_p5 = scmp.ne.s32.totalorder %s3794_s5, %s2811_s12  ;;  %s58_s30 = int_to_ptr.vmem [resolvable:$true] %s57_s30 }
  0x33   :  { %p2815_p6 = scmp.lt.u32.totalorder %s2811_s12, %s3794_s5 }
  0x35   :  { %p2817_p7 = pnand %p2815_p6, %p2812_p5 }
  0x37   :  { %2820 = shalt.err (!%p2817_p7)
}
  0x38   :  { %s2821_s18 = scalar_lea.vmem %s58_s30, 5120  ;;  %p2826_p9 = scmp.lt.s32.totalorder %s58_s30, %s58_s30 }
  0x39   :  { %p2822_p8 = scmp.ne.s32.totalorder %s58_s30, %s2821_s18  ;;  %p2827_p10 = scmp.lt.s32.totalorder %s2821_s18, %s2821_s18 }
  0x3b   :  { %p2828_p11 = por %p2827_p10, %p2826_p9 }
  0x3d   :  { %p2829_p12 = pnand %p2828_p11, %p2822_p8 }
  0x3f   :  { %2832 = shalt.err (!%p2829_p12)
}
  0x40   :  { %s2917_s1 = smov 320   ;;  %s2918_s17 = smov 20  }
  0x41   :  { %63 = dma.hbm_to_vmem [thread:$0]  %s3794_s5, 5120, %s58_s30, [#allocation8], %s2917_s1, %s2917_s1, %s2918_s17  }
  0x42   :  { %2901 = dma.done.wait [#allocation5], 512  }
  0x43   :  { %2902 = vsyncadd [#allocation5], 4294966784 }
  0x44   :  { %2903 = dma.done.wait [#allocation8], 9216  }
  0x45   :  { %2904 = vsyncadd [#allocation8], 4294958080  ;;  %v3800_v0 = vmov 0   ;;  %v2484_v1 = vld [vmem:[#allocation7 + $0x4] ss:$16 sps:$4 sm:$0xff]   ;;  %s3030_s21 = sld [smem:[#allocation3]] }
  0x46   :  { %392 = vmatprep.mubr.bf16.mxu0 %v3800_v0  ;;  %433 = vmatprep.mubr.bf16.mxu1 %v3800_v0  ;;  %v2486_v2 = vld [vmem:[#allocation7 + $0xc] ss:$16 sps:$4 sm:$0xff]   ;;  %v2488_v3 = vld [vmem:[#allocation7] ss:$16 sps:$4 sm:$0xff]   ;;  %v2489_v4 = vld [vmem:[#allocation7 + $0x8] ss:$16 sps:$4 sm:$0xff]  }
  0x47   :  { %360 = vmatprep.subr.bf16.mxu0 %v2484_v1  ;;  %401 = vmatprep.subr.bf16.mxu1 %v2486_v2  ;;  %v2490_v5 = vld [vmem:[#allocation7 + $0x24] ss:$16 sps:$4 sm:$0xff]   ;;  %v2492_v6 = vld [vmem:[#allocation7 + $0x2c] ss:$16 sps:$4 sm:$0xff]   ;;  %v2494_v7 = vld [vmem:[#allocation7 + $0x20] ss:$16 sps:$4 sm:$0xff]  }
  0x48   :  { %361 = vmatpush1.bf16.msra.mxu0 %v2488_v3  ;;  %402 = vmatpush1.bf16.msra.mxu1 %v2489_v4  ;;  %v2495_v8 = vld [vmem:[#allocation7 + $0x28] ss:$16 sps:$4 sm:$0xff]   ;;  %s3032_s5 = sld [smem:[#allocation3 + $0x1]]  ;;  %v2496_v9 = vld [vmem:[#allocation7 + $0x44] ss:$16 sps:$4 sm:$0xff]   ;;  %s3034_s22 = sld [smem:[#allocation3 + $0x2]] }
  0x49   :  { %362 = vmatprep.subr.bf16.mxu0 %v2490_v5  ;;  %403 = vmatprep.subr.bf16.mxu1 %v2492_v6  ;;  %v2498_v10 = vld [vmem:[#allocation7 + $0x4c] ss:$16 sps:$4 sm:$0xff]   ;;  %v2500_v11 = vld [vmem:[#allocation7 + $0x40] ss:$16 sps:$4 sm:$0xff]   ;;  %v2501_v12 = vld [vmem:[#allocation7 + $0x48] ss:$16 sps:$4 sm:$0xff]  }
  0x4a   :  { %v2502_v13 = vld [vmem:[#allocation7 + $0x64] ss:$16 sps:$4 sm:$0xff]   ;;  %s3036_s23 = sld [smem:[#allocation3 + $0x3]]  ;;  %v2504_v14 = vld [vmem:[#allocation7 + $0x6c] ss:$16 sps:$4 sm:$0xff]   ;;  %s3038_s25 = sld [smem:[#allocation3 + $0x4]] }
  0x4b   :  { %s3040_s26 = sld [smem:[#allocation3 + $0x5]]  ;;  %s3042_s4 = sld [smem:[#allocation3 + $0x6]]  ;;  %v2506_v15 = vld [vmem:[#allocation7 + $0x60] ss:$16 sps:$4 sm:$0xff]   ;;  %v2507_v16 = vld [vmem:[#allocation7 + $0x68] ss:$16 sps:$4 sm:$0xff]  }
  0x4c   :  { %363 = vmatpush1.bf16.msra.mxu0 %v2494_v7  ;;  %404 = vmatpush1.bf16.msra.mxu1 %v2495_v8  ;;  %s3044_s24 = sld [smem:[#allocation3 + $0x7]]  ;;  %v2508_v17 = vld [vmem:[#allocation7 + $0x84] ss:$16 sps:$4 sm:$0xff]   ;;  %v2510_v18 = vld [vmem:[#allocation7 + $0x8c] ss:$16 sps:$4 sm:$0xff]   ;;  %vm131_vm0 = vcmask 1040384  }
  0x4d   :  { %364 = vmatprep.subr.bf16.mxu0 %v2496_v9  ;;  %405 = vmatprep.subr.bf16.mxu1 %v2498_v10  ;;  %v2512_v19 = vld [vmem:[#allocation7 + $0x80] ss:$16 sps:$4 sm:$0xff]   ;;  %v2513_v20 = vld [vmem:[#allocation7 + $0x88] ss:$16 sps:$4 sm:$0xff]   ;;  %v2514_v21 = vld [vmem:[#allocation7 + $0xa4] ss:$16 sps:$4 sm:$0xff]  }
  0x4e   :  { %v2516_v22 = vld [vmem:[#allocation7 + $0xac] ss:$16 sps:$4 sm:$0xff]   ;;  %vm133_vm1 = vcmask 1041408   ;;  %v2518_v23 = vld [vmem:[#allocation7 + $0xa0] ss:$16 sps:$4 sm:$0xff]   ;;  %s79_s27 = scalar_lea.vmem [#allocation4], %s3030_s21 }
  0x4f   :  { %v2519_v24 = vld [vmem:[#allocation7 + $0xa8] ss:$16 sps:$4 sm:$0xff]   ;;  %v2520_v25 = vld [vmem:[#allocation7 + $0xc4] ss:$16 sps:$4 sm:$0xff]   ;;  %v2522_v26 = vld [vmem:[#allocation7 + $0xcc] ss:$16 sps:$4 sm:$0xff]  }
  0x50   :  { %365 = vmatpush1.bf16.msra.mxu0 %v2500_v11  ;;  %406 = vmatpush1.bf16.msra.mxu1 %v2501_v12  ;;  %v80_v27 = vld [vmem:[%s79_s27] sm:$0x1]  ;;  %s83_s28 = scalar_lea.vmem [#allocation4], %s3032_s5  ;;  %v2524_v29 = vld [vmem:[#allocation7 + $0xc0] ss:$16 sps:$4 sm:$0xff]   ;;  %s87_s29 = scalar_lea.vmem [#allocation4], %s3034_s22 }
  0x51   :  { %366 = vmatprep.subr.bf16.mxu0 %v2502_v13  ;;  %407 = vmatprep.subr.bf16.mxu1 %v2504_v14  ;;  %v84_v28 = vld [vmem:[%s83_s28] sm:$0x1]  ;;  %v81_v31 = vmax.f32 %v80_v27, 0.0  ;;  %s91_s30 = scalar_lea.vmem [#allocation4], %s3036_s23  ;;  %v2526_v35 = vld [vmem:[#allocation7 + $0xe4] ss:$16 sps:$4 sm:$0xff]  }
  0x52   :  { %v2525_v30 = vld [vmem:[#allocation7 + $0xc8] ss:$16 sps:$4 sm:$0xff]   ;;  %v85_v32 = vmax.f32 %v84_v28, 0.0  ;;  %v2528_v36 = vld [vmem:[#allocation7 + $0xec] ss:$16 sps:$4 sm:$0xff]   ;;  %s95_s0 = scalar_lea.vmem [#allocation4], %s3038_s25 }
  0x53   :  { %v88_v33 = vld [vmem:[%s87_s29] sm:$0x1]  ;;  %s99_s11 = scalar_lea.vmem [#allocation4], %s3040_s26  ;;  %s103_s12 = scalar_lea.vmem [#allocation4], %s3042_s4  ;;  %vm135_vm2 = vcmask 1042432   ;;  %vm137_vm3 = vcmask 1043456  }
  0x54   :  { %367 = vmatpush1.bf16.msra.mxu0 %v2506_v15  ;;  %408 = vmatpush1.bf16.msra.mxu1 %v2507_v16  ;;  %v92_v34 = vld [vmem:[%s91_s30] sm:$0x1]  ;;  %v89_v37 = vmax.f32 %v88_v33, 0.0  ;;  %s107_s13 = scalar_lea.vmem [#allocation4], %s3044_s24  ;;  %v111_v47 = vrot.slane %v85_v32, 7  ;;  %vm139_vm4 = vcmask 1044480  }
  0x55   :  { %368 = vmatprep.subr.bf16.mxu0 %v2508_v17  ;;  %409 = vmatprep.subr.bf16.mxu1 %v2510_v18  ;;  %v93_v38 = vmax.f32 %v92_v34, 0.0  ;;  %v96_v39 = vld [vmem:[%s95_s0] sm:$0x1]  ;;  %v2530_v51 = vld [vmem:[#allocation7 + $0xe0] ss:$16 sps:$4 sm:$0xff]   ;;  %vm141_vm5 = vcmask 1045504  }
  0x56   :  { %v100_v40 = vld [vmem:[%s99_s11] sm:$0x1]  ;;  %v97_v41 = vmax.f32 %v96_v39, 0.0  ;;  %v114_v48 = vrot.slane %v89_v37, 6  ;;  %v132_v53 = vsel %vm131_vm0, %v81_v31, %v111_v47  ;;  %v3059_v60 = vld [vmem:[#allocation9 + $0xc] ss:$20 sps:$4 sm:$0xff]  }
  0x57   :  { %v101_v42 = vmax.f32 %v100_v40, 0.0  ;;  %v104_v43 = vld [vmem:[%s103_s12] sm:$0x1]  ;;  %v117_v49 = vrot.slane %v93_v38, 5  ;;  %vm143_vm6 = vcmask 1046528   ;;  %vm2921_vm7 = vmmov 0  }
  0x58   :  { %369 = vmatpush1.bf16.msra.mxu0 %v2512_v19  ;;  %410 = vmatpush1.bf16.msra.mxu1 %v2513_v20  ;;  %v108_v44 = vld [vmem:[%s107_s13] sm:$0x1]  ;;  %v105_v45 = vmax.f32 %v104_v43, 0.0  ;;  %v120_v50 = vrot.slane %v97_v41, 4  ;;  %v134_v56 = vsel %vm133_vm1, %v132_v53, %v114_v48  ;;  %v3064_v1 = vld [vmem:[#allocation9] ss:$20 sps:$4 sm:$0xff]  }
  0x59   :  { %370 = vmatprep.subr.bf16.mxu0 %v2514_v21  ;;  %411 = vmatprep.subr.bf16.mxu1 %v2516_v22  ;;  %v109_v46 = vmax.f32 %v108_v44, 0.0  ;;  %v123_v52 = vrot.slane %v101_v42, 3  ;;  %v2531_v54 = vld [vmem:[#allocation7 + $0xe8] ss:$16 sps:$4 sm:$0xff]   ;;  %v136_v59 = vsel %vm135_vm2, %v134_v56, %v117_v49  ;;  %v3071_v4 = vld [vmem:[#allocation9 + $0x2c] ss:$20 sps:$4 sm:$0xff]   ;;  %v180_v44 = vlaneseq }
  0x5a   :  { %v126_v55 = vrot.slane %v105_v45, 2  ;;  %v3056_v57 = vld [vmem:[#allocation9 + $0x4] ss:$20 sps:$4 sm:$0xff]   ;;  %v138_v61 = vsel %vm137_vm3, %v136_v59, %v120_v50  ;;  %v3069_v3 = vld [vmem:[#allocation9 + $0x8] ss:$20 sps:$4 sm:$0xff]  }
  0x5b   :  { %3805 = vst [vmem:[#allocation19_spill] sm:$0xff] %v3056_v57  ;;  %v129_v58 = vrot.slane %v109_v46, 1  ;;  %v140_v62 = vsel %vm139_vm4, %v138_v61, %v123_v52  ;;  %v3073_v6 = vld [vmem:[#allocation9 + $0x34] ss:$20 sps:$4 sm:$0xff]   ;;  %v3079_v8 = vld [vmem:[#allocation9 + $0x30] ss:$20 sps:$4 sm:$0xff]  }
  0x5c   :  { %371 = vmatpush1.bf16.msra.mxu0 %v2518_v23  ;;  %412 = vmatpush1.bf16.msra.mxu1 %v2519_v24  ;;  %v142_v63 = vsel %vm141_vm5, %v140_v62, %v126_v55  ;;  %v3075_v7 = vld [vmem:[#allocation9 + $0x28] ss:$20 sps:$4 sm:$0xff]   ;;  %v3089_v11 = vld [vmem:[#allocation9 + $0x50] ss:$20 sps:$4 sm:$0xff]   ;;  %v3093_v12 = vld [vmem:[#allocation9 + $0x58] ss:$20 sps:$4 sm:$0xff]  }
  0x5d   :  { %372 = vmatprep.subr.bf16.mxu0 %v2520_v25  ;;  %413 = vmatprep.subr.bf16.mxu1 %v2522_v26  ;;  %v144_v2 = vsel %vm143_vm6, %v142_v63, %v129_v58  ;;  %v3083_v9 = vld [vmem:[#allocation9 + $0x54] ss:$20 sps:$4 sm:$0xff]   ;;  %v3085_v10 = vld [vmem:[#allocation9 + $0x5c] ss:$20 sps:$4 sm:$0xff]   ;;  %v3099_v14 = vld [vmem:[#allocation9 + $0x84] ss:$20 sps:$4 sm:$0xff]  }
  0x5e   :  { %v145_v5 = vpack.c.bf16 %v144_v2, %v144_v2  ;;  %v3095_v13 = vld [vmem:[#allocation9 + $0x7c] ss:$20 sps:$4 sm:$0xff]   ;;  %v3101_v15 = vld [vmem:[#allocation9 + $0x78] ss:$20 sps:$4 sm:$0xff]   ;;  %v3105_v16 = vld [vmem:[#allocation9 + $0x80] ss:$20 sps:$4 sm:$0xff]  }
  0x5f   :  { %v3109_v17 = vld [vmem:[#allocation9 + $0xa4] ss:$20 sps:$4 sm:$0xff]   ;;  %v3111_v18 = vld [vmem:[#allocation9 + $0xac] ss:$20 sps:$4 sm:$0xff]   ;;  %v3115_v20 = vld [vmem:[#allocation9 + $0xa8] ss:$20 sps:$4 sm:$0xff]  }
  0x60   :  { %373 = vmatpush1.bf16.msra.mxu0 %v2524_v29  ;;  %414 = vmatpush1.bf16.msra.mxu1 %v2525_v30  ;;  %v3113_v19 = vld [vmem:[#allocation9 + $0xa0] ss:$20 sps:$4 sm:$0xff]   ;;  %v3127_v23 = vld [vmem:[#allocation9 + $0xc8] ss:$20 sps:$4 sm:$0xff]   ;;  %v3129_v24 = vld [vmem:[#allocation9 + $0xd0] ss:$20 sps:$4 sm:$0xff]  }
  0x61   :  { %374 = vmatprep.subr.bf16.mxu0 %v2526_v35  ;;  %415 = vmatprep.subr.bf16.mxu1 %v2528_v36  ;;  %v3117_v21 = vld [vmem:[#allocation9 + $0xcc] ss:$20 sps:$4 sm:$0xff]   ;;  %v3119_v22 = vld [vmem:[#allocation9 + $0xd4] ss:$20 sps:$4 sm:$0xff]   ;;  %v3135_v26 = vld [vmem:[#allocation9 + $0xfc] ss:$20 sps:$4 sm:$0xff]  }
  0x62   :  { %v3133_v25 = vld [vmem:[#allocation9 + $0xf4] ss:$20 sps:$4 sm:$0xff]   ;;  %v3139_v27 = vld [vmem:[#allocation9 + $0xf0] ss:$20 sps:$4 sm:$0xff]   ;;  %v3141_v28 = vld [vmem:[#allocation9 + $0xf8] ss:$20 sps:$4 sm:$0xff]  }
  0x63   :  { %v3145_v29 = vld [vmem:[#allocation9 + $0x11c] ss:$20 sps:$4 sm:$0xff]   ;;  %v3147_v30 = vld [vmem:[#allocation9 + $0x124] ss:$20 sps:$4 sm:$0xff]   ;;  %v3153_v32 = vld [vmem:[#allocation9 + $0x120] ss:$20 sps:$4 sm:$0xff]  }
  0x64   :  { %375 = vmatpush1.bf16.msra.mxu0 %v2530_v51  ;;  %416 = vmatpush1.bf16.msra.mxu1 %v2531_v54  ;;  %v3151_v31 = vld [vmem:[#allocation9 + $0x118] ss:$20 sps:$4 sm:$0xff]   ;;  %v3802_v35 = vmov 0.0   ;;  %v181_v45 = vshrl.u32 %v180_v44, 7 }
  0x65   :  { %653 = vmatprep.subr.bf16.mxu0 %v3056_v57  ;;  %694 = vmatprep.subr.bf16.mxu1 %v3059_v60  ;;  %v442_v33 = vld [vmem:[%s3791_s2] sm:$0x1] }
  0x66   :  { %v444_v34 = vpack.c.bf16 %v442_v33, %v442_v33  ;;  %v182_v46 = vsub.s32 0, %v181_v45  ;;  %v178_v47 = vld [vmem:[%s3795_s6] sm:$0xf]  ;;  %v186_v48 = vsub.s32 1, %v181_v45  ;;  %v194_v51 = vsub.s32 3, %v181_v45 }
  0x67   :  { %393 = vmatmul.mubr.bf16.vlgmr.msra.gmra.mrb[0].mxu0 %v145_v5  ;;  %434 = vmatmul.mubr.bf16.vlgmr.msra.gmra.mrb[0].mxu1 %v145_v5  ;;  %v190_v5 = vsub.s32 2, %v181_v45 }
  0x68   :  { %654 = vmatpush1.bf16.msra.mxu0 %v3064_v1  ;;  %695 = vmatpush1.bf16.msra.mxu1 %v3069_v3  ;;  %v183_v49 = vrot.slane %v178_v47, %v182_v46  ;;  %v187_v50 = vrot.slane %v178_v47, %v186_v48  ;;  %v195_v61 = vrot.slane %v178_v47, %v194_v51 }
  0x69   :  { %655 = vmatprep.subr.bf16.mxu0 %v3071_v4  ;;  %696 = vmatprep.subr.bf16.mxu1 %v3073_v6 }
  0x6a   :  { %685 = vmatprep.mubr.bf16.mxu0 %v3800_v0  ;;  %726 = vmatprep.mubr.bf16.mxu1 %v3800_v0 }
  0x6c   :  { %656 = vmatpush1.bf16.msra.mxu0 %v3075_v7  ;;  %697 = vmatpush1.bf16.msra.mxu1 %v3079_v8 }
  0x6d   :  { %657 = vmatprep.subr.bf16.mxu0 %v3083_v9  ;;  %698 = vmatprep.subr.bf16.mxu1 %v3085_v10 }
  0x70   :  { %658 = vmatpush1.bf16.msra.mxu0 %v3089_v11  ;;  %699 = vmatpush1.bf16.msra.mxu1 %v3093_v12 }
  0x71   :  { %659 = vmatprep.subr.bf16.mxu0 %v3095_v13  ;;  %700 = vmatprep.subr.bf16.mxu1 %v3099_v14 }
  0x74   :  { %660 = vmatpush1.bf16.msra.mxu0 %v3101_v15  ;;  %701 = vmatpush1.bf16.msra.mxu1 %v3105_v16 }
  0x75   :  { %661 = vmatprep.subr.bf16.mxu0 %v3109_v17  ;;  %702 = vmatprep.subr.bf16.mxu1 %v3111_v18 }
  0x78   :  { %662 = vmatpush1.bf16.msra.mxu0 %v3113_v19  ;;  %703 = vmatpush1.bf16.msra.mxu1 %v3115_v20 }
  0x79   :  { %663 = vmatprep.subr.bf16.mxu0 %v3117_v21  ;;  %704 = vmatprep.subr.bf16.mxu1 %v3119_v22 }
  0x7c   :  { %664 = vmatpush1.bf16.msra.mxu0 %v3127_v23  ;;  %705 = vmatpush1.bf16.msra.mxu1 %v3129_v24 }
  0x7d   :  { %665 = vmatprep.subr.bf16.mxu0 %v3133_v25  ;;  %706 = vmatprep.subr.bf16.mxu1 %v3135_v26 }
  0x80   :  { %666 = vmatpush1.bf16.msra.mxu0 %v3139_v27  ;;  %707 = vmatpush1.bf16.msra.mxu1 %v3141_v28 }
  0x81   :  { %667 = vmatprep.subr.bf16.mxu0 %v3145_v29  ;;  %708 = vmatprep.subr.bf16.mxu1 %v3147_v30 }
  0x84   :  { %668 = vmatpush1.bf16.msra.mxu0 %v3151_v31  ;;  %709 = vmatpush1.bf16.msra.mxu1 %v3153_v32 }
  0x85   :  { %812 = vmatprep.subr.bf16.mxu0 %v3056_v57  ;;  %853 = vmatprep.subr.bf16.mxu1 %v3059_v60 }
  0x87   :  { %686 = vmatmul.mubr.bf16.vlgmr.msra.gmra.mrb[4].mxu0 %v444_v34  ;;  %727 = vmatmul.mubr.bf16.vlgmr.msra.gmra.mrb[4].mxu1 %v444_v34 }
  0x88   :  { %813 = vmatpush1.bf16.msra.mxu0 %v3064_v1  ;;  %854 = vmatpush1.bf16.msra.mxu1 %v3069_v3 }
  0x89   :  { %814 = vmatprep.subr.bf16.mxu0 %v3071_v4  ;;  %855 = vmatprep.subr.bf16.mxu1 %v3073_v6 }
  0x8a   :  { %844 = vmatprep.mubr.bf16.mxu0 %v3800_v0  ;;  %885 = vmatprep.mubr.bf16.mxu1 %v3800_v0 }
  0x8c   :  { %815 = vmatpush1.bf16.msra.mxu0 %v3075_v7  ;;  %856 = vmatpush1.bf16.msra.mxu1 %v3079_v8 }
  0x8d   :  { %816 = vmatprep.subr.bf16.mxu0 %v3083_v9  ;;  %857 = vmatprep.subr.bf16.mxu1 %v3085_v10 }
  0x90   :  { %817 = vmatpush1.bf16.msra.mxu0 %v3089_v11  ;;  %858 = vmatpush1.bf16.msra.mxu1 %v3093_v12 }
  0x91   :  { %818 = vmatprep.subr.bf16.mxu0 %v3095_v13  ;;  %859 = vmatprep.subr.bf16.mxu1 %v3099_v14 }
  0x94   :  { %819 = vmatpush1.bf16.msra.mxu0 %v3101_v15  ;;  %860 = vmatpush1.bf16.msra.mxu1 %v3105_v16 }
  0x95   :  { %820 = vmatprep.subr.bf16.mxu0 %v3109_v17  ;;  %861 = vmatprep.subr.bf16.mxu1 %v3111_v18 }
  0x98   :  { %821 = vmatpush1.bf16.msra.mxu0 %v3113_v19  ;;  %862 = vmatpush1.bf16.msra.mxu1 %v3115_v20 }
  0x99   :  { %822 = vmatprep.subr.bf16.mxu0 %v3117_v21  ;;  %863 = vmatprep.subr.bf16.mxu1 %v3119_v22 }
  0x9c   :  { %823 = vmatpush1.bf16.msra.mxu0 %v3127_v23  ;;  %864 = vmatpush1.bf16.msra.mxu1 %v3129_v24 }
  0x9d   :  { %824 = vmatprep.subr.bf16.mxu0 %v3133_v25  ;;  %865 = vmatprep.subr.bf16.mxu1 %v3135_v26 }
  0xa0   :  { %825 = vmatpush1.bf16.msra.mxu0 %v3139_v27  ;;  %866 = vmatpush1.bf16.msra.mxu1 %v3141_v28 }
  0xa1   :  { %826 = vmatprep.subr.bf16.mxu0 %v3145_v29  ;;  %867 = vmatprep.subr.bf16.mxu1 %v3147_v30 }
  0xa4   :  { %827 = vmatpush1.bf16.msra.mxu0 %v3151_v31  ;;  %868 = vmatpush1.bf16.msra.mxu1 %v3153_v32 }
  0xa5   :  { %984 = vmatprep.subr.bf16.mxu1 %v3056_v57  ;;  %2308 = vmatprep.subr.bf16.mxu0 %v3802_v35 }
 0x13a   :  { %v394_v36 = vpop.f32.mrb[0].mxu0  ;;  %v435_v37 = vpop.f32.mrb[0].mxu1 }
 0x13b   :  { %v396_v38 = vpop.f32.mrb[1].mxu0  ;;  %v437_v39 = vpop.f32.mrb[1].mxu1  ;;  %v3201_v52 = vadd.f32 %v394_v36, %v183_v49 }
 0x13c   :  { %v398_v40 = vpop.f32.mrb[2].mxu0  ;;  %v439_v41 = vpop.f32.mrb[2].mxu1  ;;  %v3203_v53 = vadd.f32 %v396_v38, %v187_v50  ;;  %v3207_v36 = vadd.f32 %v437_v39, %v195_v61  ;;  %v191_v38 = vrot.slane %v178_v47, %v190_v5  ;;  %v443_v47 = vld [vmem:[%s3792_s3] sm:$0x1] }
 0x13d   :  { %v399_v42 = vpop.f32.mrb[3].mxu0  ;;  %v440_v43 = vpop.f32.mrb[3].mxu1 }
 0x13e   :  { %v3210_v43 = vadd.f32 %v435_v37, %v191_v38  ;;  %v3249_v38 = vld [vmem:[#allocation9 + $0xd8] ss:$20 sps:$4 sm:$0xff]  }
 0x15a   :  { %v687_v54 = vpop.f32.mrb[4].mxu0  ;;  %v728_v55 = vpop.f32.mrb[4].mxu1 }
 0x15b   :  { %v735_v56 = vadd.f32 %v687_v54, %v3201_v52  ;;  %v689_v58 = vpop.f32.mrb[5].mxu0  ;;  %v730_v59 = vpop.f32.mrb[5].mxu1  ;;  %v737_v46 = vadd.f32 %v728_v55, %v3210_v43 }
 0x15c   :  { %v736_v62 = vadd.f32 %v689_v58, %v3203_v53  ;;  %v691_v63 = vpop.f32.mrb[6].mxu0  ;;  %v732_v2 = vpop.f32.mrb[6].mxu1  ;;  %v738_v42 = vadd.f32 %v730_v59, %v3207_v36 }
 0x15d   :  { %v2204_v33 = vmul.f32 -1.442695, %v735_v56  ;;  %v692_v34 = vpop.f32.mrb[7].mxu0  ;;  %v733_v40 = vpop.f32.mrb[7].mxu1  ;;  %v3219_v2 = vld [vmem:[#allocation9 + $0x10] ss:$20 sps:$4 sm:$0xff]  }
 0x15e   :  { %v2205_v41 = vmul.f32 -1.442695, %v736_v62  ;;  %v2206_v44 = vmul.f32 -1.442695, %v738_v42  ;;  %v3231_v34 = vld [vmem:[#allocation9 + $0x60] ss:$20 sps:$4 sm:$0xff]  }
 0x15f   :  { %2588 = vpow2.f32 %v2204_v33  ;;  %v3222_v33 = vld [vmem:[#allocation9 + $0x38] ss:$20 sps:$4 sm:$0xff]   ;;  %v3237_v40 = vld [vmem:[#allocation9 + $0x88] ss:$20 sps:$4 sm:$0xff]   ;;  %v3255_v42 = vld [vmem:[#allocation9 + $0x100] ss:$20 sps:$4 sm:$0xff]  }
 0x160   :  { %2590 = vpow2.f32 %v2205_v41  ;;  %v3243_v41 = vld [vmem:[#allocation9 + $0xb0] ss:$20 sps:$4 sm:$0xff]  }
 0x161   :  { %2592 = vpow2.f32 %v2206_v44  ;;  %v3261_v44 = vld [vmem:[#allocation9 + $0x128] ss:$20 sps:$4 sm:$0xff]  }
 0x162   :  { %2594 = vtanh.f32 %v737_v46 }
 0x169   :  { %v2589_v48 = vpop.eup %2588 }
 0x16a   :  { %v2591_v49 = vpop.eup %2590  ;;  %v742_v50 = vadd.f32 1.0, %v2589_v48 }
 0x16b   :  { %v748_v45 = vadd.f32 1.0, %v2591_v49  ;;  %v2593_v51 = vpop.eup %2592 }
 0x16c   :  { %2596 = vrcp.f32 %v742_v50  ;;  %v2595_v39 = vpop.eup %2594  ;;  %v755_v58 = vadd.f32 1.0, %v2593_v51 }
 0x16d   :  { %2598 = vrcp.f32 %v748_v45 }
 0x16e   :  { %2600 = vrcp.f32 %v755_v58 }
 0x176   :  { %v2597_v54 = vpop.eup %2596 }
 0x177   :  { %v2599_v37 = vpop.eup %2598  ;;  %v759_v56 = vmul.f32 %v2597_v54, %v2595_v39 }
 0x178   :  { %v758_v59 = vmul.f32 %v2599_v37, %v443_v47  ;;  %v2601_v61 = vpop.eup %2600 }
 0x17a   :  { %v3216_v55 = vadd.f32 %v759_v56, %v758_v59 }
 0x17c   :  { %2602 = vtanh.f32 %v3216_v55 }
 0x186   :  { %v2603_v62 = vpop.eup %2602 }
 0x187   :  { %v762_v63 = vmul.f32 %v2603_v62, %v2601_v61 }
 0x189   :  { %v763_v5 = vpack.c.bf16 %v762_v63, %v762_v63 }
 0x18b   :  { %845 = vmatmul.mubr.bf16.vlgmr.msra.gmra.mrb[8].mxu0 %v763_v5  ;;  %886 = vmatmul.mubr.bf16.vlgmr.msra.gmra.mrb[8].mxu1 %v763_v5 }
 0x18c   :  { %2309 = vmatpush3.bf16.msra.mxu0 %v3219_v2  ;;  %2324 = vmatprep.mubr.msk.bf16.mxu0 %vm2921_vm7, %v3802_v35 }
 0x18d   :  { %2310 = vmatprep.subr.bf16.mxu0 %v3802_v35  ;;  %985 = vmatpush1.bf16.msra.mxu1 %v3064_v1 }
 0x18e   :  { %986 = vmatprep.subr.bf16.mxu1 %v3071_v4  ;;  %1016 = vmatprep.mubr.bf16.mxu1 %v3800_v0 }
 0x190   :  { %2311 = vmatpush3.bf16.msra.mxu0 %v3222_v33 }
 0x191   :  { %2312 = vmatprep.subr.bf16.mxu0 %v3802_v35  ;;  %987 = vmatpush1.bf16.msra.mxu1 %v3075_v7 }
 0x192   :  { %988 = vmatprep.subr.bf16.mxu1 %v3083_v9 }
 0x194   :  { %2313 = vmatpush3.bf16.msra.mxu0 %v3231_v34 }
 0x195   :  { %2314 = vmatprep.subr.bf16.mxu0 %v3802_v35  ;;  %989 = vmatpush1.bf16.msra.mxu1 %v3089_v11 }
 0x196   :  { %990 = vmatprep.subr.bf16.mxu1 %v3095_v13 }
 0x198   :  { %2315 = vmatpush3.bf16.msra.mxu0 %v3237_v40 }
 0x199   :  { %2316 = vmatprep.subr.bf16.mxu0 %v3802_v35  ;;  %991 = vmatpush1.bf16.msra.mxu1 %v3101_v15 }
 0x19a   :  { %992 = vmatprep.subr.bf16.mxu1 %v3109_v17 }
 0x19c   :  { %2317 = vmatpush3.bf16.msra.mxu0 %v3243_v41 }
 0x19d   :  { %2318 = vmatprep.subr.bf16.mxu0 %v3802_v35  ;;  %993 = vmatpush1.bf16.msra.mxu1 %v3113_v19 }
 0x19e   :  { %994 = vmatprep.subr.bf16.mxu1 %v3117_v21 }
 0x1a0   :  { %2319 = vmatpush3.bf16.msra.mxu0 %v3249_v38 }
 0x1a1   :  { %2320 = vmatprep.subr.bf16.mxu0 %v3802_v35  ;;  %995 = vmatpush1.bf16.msra.mxu1 %v3127_v23 }
 0x1a2   :  { %996 = vmatprep.subr.bf16.mxu1 %v3133_v25 }
 0x1a4   :  { %2321 = vmatpush3.bf16.msra.mxu0 %v3255_v42 }
 0x1a5   :  { %2322 = vmatprep.subr.bf16.mxu0 %v3802_v35  ;;  %997 = vmatpush1.bf16.msra.mxu1 %v3139_v27 }
 0x1a6   :  { %998 = vmatprep.subr.bf16.mxu1 %v3145_v29 }
 0x1a8   :  { %2323 = vmatpush3.bf16.msra.mxu0 %v3261_v44 }
 0x1a9   :  { %1025 = vmatprep.subr.bf16.mxu0 %v3059_v60  ;;  %999 = vmatpush1.bf16.msra.mxu1 %v3151_v31 }
 0x1aa   :  { %2328 = vmatprep.subr.bf16.mxu1 %v3802_v35 }
 0x1ab   :  { %2325 = vmatmul.mubr.bf16.vlgmr.msra.gmra.mrb[12].mxu0 %v763_v5 }
 0x1ac   :  { %1026 = vmatpush1.bf16.msra.mxu0 %v3069_v3  ;;  %1057 = vmatprep.mubr.bf16.mxu0 %v3800_v0 }
 0x1ad   :  { %1027 = vmatprep.subr.bf16.mxu0 %v3073_v6 }
 0x1b0   :  { %1028 = vmatpush1.bf16.msra.mxu0 %v3079_v8 }
 0x1b1   :  { %1029 = vmatprep.subr.bf16.mxu0 %v3085_v10 }
 0x1b4   :  { %1030 = vmatpush1.bf16.msra.mxu0 %v3093_v12 }
 0x1b5   :  { %1031 = vmatprep.subr.bf16.mxu0 %v3099_v14 }
 0x1b8   :  { %1032 = vmatpush1.bf16.msra.mxu0 %v3105_v16 }
 0x1b9   :  { %1033 = vmatprep.subr.bf16.mxu0 %v3111_v18 }
 0x1bc   :  { %1034 = vmatpush1.bf16.msra.mxu0 %v3115_v20 }
 0x1bd   :  { %1035 = vmatprep.subr.bf16.mxu0 %v3119_v22 }
 0x1c0   :  { %1036 = vmatpush1.bf16.msra.mxu0 %v3129_v24 }
 0x1c1   :  { %1037 = vmatprep.subr.bf16.mxu0 %v3135_v26 }
 0x1c4   :  { %1038 = vmatpush1.bf16.msra.mxu0 %v3141_v28 }
 0x1c5   :  { %1039 = vmatprep.subr.bf16.mxu0 %v3147_v30 }
 0x1c8   :  { %1040 = vmatpush1.bf16.msra.mxu0 %v3153_v32 }
 0x1c9   :  { %1154 = vmatprep.subr.bf16.mxu0 %v3056_v57 }
 0x25e   :  { %v846_v46 = vpop.f32.mrb[8].mxu0  ;;  %v887_v48 = vpop.f32.mrb[8].mxu1 }
 0x25f   :  { %v940_v49 = vrot.slane %v846_v46, 7  ;;  %v848_v50 = vpop.f32.mrb[9].mxu0  ;;  %v889_v45 = vpop.f32.mrb[9].mxu1  ;;  %v942_v5 = vrot.slane %v887_v48, 7 }
 0x260   :  { %v941_v51 = vrot.slane %v848_v50, 7  ;;  %v850_v39 = vpop.f32.mrb[10].mxu0  ;;  %v891_v47 = vpop.f32.mrb[10].mxu1  ;;  %v943_v62 = vrot.slane %v889_v45, 7  ;;  %v972_v45 = vrot.slane %v3216_v55, 7  ;;  %v3806_v55 = vmov 0  }
 0x261   :  { %v948_v54 = vadd.f32 %v940_v49, %v3201_v52  ;;  %v851_v37 = vpop.f32.mrb[11].mxu0  ;;  %v892_v56 = vpop.f32.mrb[11].mxu1  ;;  %v950_v0 = vadd.f32 %v942_v5, %v3210_v43 }
 0x262   :  { %v949_v58 = vadd.f32 %v941_v51, %v3203_v53  ;;  %v951_v63 = vadd.f32 %v943_v62, %v3207_v36 }
 0x263   :  { %v2215_v59 = vmul.f32 -1.442695, %v948_v54 }
 0x264   :  { %v2216_v61 = vmul.f32 -1.442695, %v949_v58  ;;  %v2217_v46 = vmul.f32 -1.442695, %v951_v63 }
 0x265   :  { %2604 = vpow2.f32 %v2215_v59 }
 0x266   :  { %2606 = vpow2.f32 %v2216_v61 }
 0x267   :  { %2608 = vpow2.f32 %v2217_v46 }
 0x268   :  { %2610 = vtanh.f32 %v950_v0 }
 0x26f   :  { %v2605_v50 = vpop.eup %2604 }
 0x270   :  { %v2607_v39 = vpop.eup %2606  ;;  %v955_v47 = vadd.f32 1.0, %v2605_v50 }
 0x271   :  { %v961_v49 = vadd.f32 1.0, %v2607_v39  ;;  %v2609_v51 = vpop.eup %2608 }
 0x272   :  { %2612 = vrcp.f32 %v955_v47  ;;  %v2611_v54 = vpop.eup %2610  ;;  %v968_v59 = vadd.f32 1.0, %v2609_v51 }
 0x273   :  { %2614 = vrcp.f32 %v961_v49 }
 0x274   :  { %2616 = vrcp.f32 %v968_v59 }
 0x27c   :  { %v2613_v37 = vpop.eup %2612 }
 0x27d   :  { %v2615_v56 = vpop.eup %2614  ;;  %v975_v58 = vmul.f32 %v2613_v37, %v2611_v54 }
 0x27e   :  { %v974_v48 = vmul.f32 %v2615_v56, %v972_v45  ;;  %v3292_v61 = vpop.f32.mrb[12].mxu0  ;;  %v2617_v46 = vpop.eup %2616 }
 0x27f   :  { %v2326_v62 = vpop.f32.mrb[13].mxu0 }
 0x280   :  { %v3294_v63 = vadd.f32 %v975_v58, %v974_v48  ;;  %v931_v5 = vpop.f32.mrb[14].mxu0 }
 0x281   :  { %v2327_v0 = vpop.f32.mrb[15].mxu0 }
 0x282   :  { %2618 = vtanh.f32 %v3294_v63 }
 0x28c   :  { %v2619_v50 = vpop.eup %2618 }
 0x28d   :  { %v978_v39 = vmul.f32 %v2619_v50, %v2617_v46 }
 0x28f   :  { %v979_v47 = vpack.c.bf16 %v978_v39, %v978_v39 }
 0x291   :  { %v981_v49 = vshrl.u32 %v979_v47, 16 }
 0x293   :  { %1017 = vmatmul.mubr.bf16.vlgmr.msra.gmra.mrb[12].mxu1 %v981_v49  ;;  %1058 = vmatmul.mubr.bf16.vlgmr.msra.gmra.mrb[16].mxu0 %v981_v49 }
 0x294   :  { %2329 = vmatpush3.bf16.msra.mxu1 %v3219_v2  ;;  %2344 = vmatprep.mubr.msk.bf16.mxu1 %vm2921_vm7, %v3802_v35 }
 0x295   :  { %2330 = vmatprep.subr.bf16.mxu1 %v3802_v35  ;;  %1155 = vmatpush1.bf16.msra.mxu0 %v3064_v1 }
 0x296   :  { %1156 = vmatprep.subr.bf16.mxu0 %v3071_v4  ;;  %1186 = vmatprep.mubr.bf16.mxu0 %v3806_v55 }
 0x298   :  { %2331 = vmatpush3.bf16.msra.mxu1 %v3222_v33 }
 0x299   :  { %2332 = vmatprep.subr.bf16.mxu1 %v3802_v35  ;;  %1157 = vmatpush1.bf16.msra.mxu0 %v3075_v7 }
 0x29a   :  { %1158 = vmatprep.subr.bf16.mxu0 %v3083_v9 }
 0x29c   :  { %2333 = vmatpush3.bf16.msra.mxu1 %v3231_v34 }
 0x29d   :  { %2334 = vmatprep.subr.bf16.mxu1 %v3802_v35  ;;  %1159 = vmatpush1.bf16.msra.mxu0 %v3089_v11 }
 0x29e   :  { %1160 = vmatprep.subr.bf16.mxu0 %v3095_v13 }
 0x2a0   :  { %2335 = vmatpush3.bf16.msra.mxu1 %v3237_v40 }
 0x2a1   :  { %2336 = vmatprep.subr.bf16.mxu1 %v3802_v35  ;;  %1161 = vmatpush1.bf16.msra.mxu0 %v3101_v15 }
 0x2a2   :  { %1162 = vmatprep.subr.bf16.mxu0 %v3109_v17 }
 0x2a4   :  { %2337 = vmatpush3.bf16.msra.mxu1 %v3243_v41 }
 0x2a5   :  { %2338 = vmatprep.subr.bf16.mxu1 %v3802_v35  ;;  %1163 = vmatpush1.bf16.msra.mxu0 %v3113_v19 }
 0x2a6   :  { %1164 = vmatprep.subr.bf16.mxu0 %v3117_v21 }
 0x2a8   :  { %2339 = vmatpush3.bf16.msra.mxu1 %v3249_v38 }
 0x2a9   :  { %2340 = vmatprep.subr.bf16.mxu1 %v3802_v35  ;;  %1165 = vmatpush1.bf16.msra.mxu0 %v3127_v23 }
 0x2aa   :  { %1166 = vmatprep.subr.bf16.mxu0 %v3133_v25 }
 0x2ac   :  { %2341 = vmatpush3.bf16.msra.mxu1 %v3255_v42 }
 0x2ad   :  { %2342 = vmatprep.subr.bf16.mxu1 %v3802_v35  ;;  %1167 = vmatpush1.bf16.msra.mxu0 %v3139_v27 }
 0x2ae   :  { %1168 = vmatprep.subr.bf16.mxu0 %v3145_v29 }
 0x2b0   :  { %2343 = vmatpush3.bf16.msra.mxu1 %v3261_v44 }
 0x2b1   :  { %1195 = vmatprep.subr.bf16.mxu1 %v3059_v60  ;;  %1169 = vmatpush1.bf16.msra.mxu0 %v3151_v31 }
 0x2b2   :  { %2348 = vmatprep.subr.bf16.mxu0 %v3802_v35 }
 0x2b3   :  { %2345 = vmatmul.mubr.bf16.vlgmr.msra.gmra.mrb[16].mxu1 %v981_v49 }
 0x2b4   :  { %1196 = vmatpush1.bf16.msra.mxu1 %v3069_v3  ;;  %1227 = vmatprep.mubr.bf16.mxu1 %v3806_v55 }
 0x2b5   :  { %1197 = vmatprep.subr.bf16.mxu1 %v3073_v6 }
 0x2b8   :  { %1198 = vmatpush1.bf16.msra.mxu1 %v3079_v8 }
 0x2b9   :  { %1199 = vmatprep.subr.bf16.mxu1 %v3085_v10 }
 0x2bc   :  { %1200 = vmatpush1.bf16.msra.mxu1 %v3093_v12 }
 0x2bd   :  { %1201 = vmatprep.subr.bf16.mxu1 %v3099_v14 }
 0x2c0   :  { %1202 = vmatpush1.bf16.msra.mxu1 %v3105_v16 }
 0x2c1   :  { %1203 = vmatprep.subr.bf16.mxu1 %v3111_v18 }
 0x2c4   :  { %1204 = vmatpush1.bf16.msra.mxu1 %v3115_v20 }
 0x2c5   :  { %1205 = vmatprep.subr.bf16.mxu1 %v3119_v22 }
 0x2c8   :  { %1206 = vmatpush1.bf16.msra.mxu1 %v3129_v24 }
 0x2c9   :  { %1207 = vmatprep.subr.bf16.mxu1 %v3135_v26 }
 0x2cc   :  { %1208 = vmatpush1.bf16.msra.mxu1 %v3141_v28 }
 0x2cd   :  { %1209 = vmatprep.subr.bf16.mxu1 %v3147_v30 }
 0x2d0   :  { %1210 = vmatpush1.bf16.msra.mxu1 %v3153_v32 }
 0x2d1   :  { %1326 = vmatprep.subr.bf16.mxu1 %v3056_v57 }
 0x366   :  { %v1018_v51 = vpop.f32.mrb[12].mxu1  ;;  %v1059_v54 = vpop.f32.mrb[16].mxu0 }
 0x367   :  { %v1111_v37 = vrot.slane %v1018_v51, 6  ;;  %v1020_v45 = vpop.f32.mrb[13].mxu1  ;;  %v1061_v56 = vpop.f32.mrb[17].mxu0  ;;  %v1113_v35 = vrot.slane %v1059_v54, 6 }
 0x368   :  { %v1112_v58 = vrot.slane %v1020_v45, 6  ;;  %v1022_v59 = vpop.f32.mrb[14].mxu1  ;;  %v1063_v48 = vpop.f32.mrb[18].mxu0  ;;  %v1114_v47 = vrot.slane %v1061_v56, 6  ;;  %v1143_v56 = vrot.slane %v3294_v63, 7 }
 0x369   :  { %v1119_v62 = vadd.f32 %v1111_v37, %v3201_v52  ;;  %v1023_v5 = vpop.f32.mrb[15].mxu1  ;;  %v1064_v0 = vpop.f32.mrb[19].mxu0  ;;  %v1121_v57 = vadd.f32 %v1113_v35, %v3210_v43  ;;  %v3357_v35 = vld [vmem:[%s3796_s7] sm:$0x1] }
 0x36a   :  { %v1120_v46 = vadd.f32 %v1112_v58, %v3203_v53  ;;  %v1122_v49 = vadd.f32 %v1114_v47, %v3207_v36 }
 0x36b   :  { %v2218_v50 = vmul.f32 -1.442695, %v1119_v62 }
 0x36c   :  { %v2219_v39 = vmul.f32 -1.442695, %v1120_v46  ;;  %v2220_v51 = vmul.f32 -1.442695, %v1122_v49 }
 0x36d   :  { %2620 = vpow2.f32 %v2218_v50 }
 0x36e   :  { %2622 = vpow2.f32 %v2219_v39 }
 0x36f   :  { %2624 = vpow2.f32 %v2220_v51 }
 0x370   :  { %2626 = vtanh.f32 %v1121_v57 }
 0x377   :  { %v2621_v45 = vpop.eup %2620 }
 0x378   :  { %v2623_v59 = vpop.eup %2622  ;;  %v1126_v48 = vadd.f32 1.0, %v2621_v45  ;;  %v935_v45 = vadd.f32 %v3357_v35, %v3292_v61 }
 0x379   :  { %v1132_v37 = vadd.f32 1.0, %v2623_v59  ;;  %v2625_v58 = vpop.eup %2624 }
 0x37a   :  { %2628 = vrcp.f32 %v1126_v48  ;;  %v2627_v62 = vpop.eup %2626  ;;  %v1139_v50 = vadd.f32 1.0, %v2625_v58 }
 0x37b   :  { %2630 = vrcp.f32 %v1132_v37 }
 0x37c   :  { %2632 = vrcp.f32 %v1139_v50 }
 0x384   :  { %v2629_v5 = vpop.eup %2628 }
 0x385   :  { %v2631_v0 = vpop.eup %2630  ;;  %v1146_v46 = vmul.f32 %v2629_v5, %v2627_v62 }
 0x386   :  { %v1145_v54 = vmul.f32 %v2631_v0, %v1143_v56  ;;  %v1100_v39 = vpop.f32.mrb[16].mxu1  ;;  %v2633_v37 = vpop.eup %2632  ;;  %v3807_v0 = vmov 0.0  }
 0x387   :  { %v1106_v57 = vadd.f32 %v1100_v39, %v3357_v35  ;;  %v2346_v47 = vpop.f32.mrb[17].mxu1 }
 0x388   :  { %v3360_v49 = vadd.f32 %v1146_v46, %v1145_v54  ;;  %v1103_v51 = vpop.f32.mrb[18].mxu1 }
 0x389   :  { %v2052_v63 = vrot.slane %v1106_v57, 7  ;;  %v2347_v59 = vpop.f32.mrb[19].mxu1 }
 0x38a   :  { %2634 = vtanh.f32 %v3360_v49  ;;  %v1313_v59 = vrot.slane %v3360_v49, 7 }
 0x38b   :  { %v3366_v48 = vsel %vm131_vm0, %v935_v45, %v2052_v63 }
 0x394   :  { %v2635_v58 = vpop.eup %2634 }
 0x395   :  { %v1149_v62 = vmul.f32 %v2635_v58, %v2633_v37 }
 0x397   :  { %v1150_v5 = vpack.c.bf16 %v1149_v62, %v1149_v62 }
 0x399   :  { %v1152_v56 = vrot.slane %v1150_v5, 1 }
 0x39b   :  { %1187 = vmatmul.mubr.bf16.vlgmr.msra.gmra.mrb[20].mxu0 %v1152_v56  ;;  %1228 = vmatmul.mubr.bf16.vlgmr.msra.gmra.mrb[20].mxu1 %v1152_v56 }
 0x39c   :  { %2349 = vmatpush3.bf16.msra.mxu0 %v3219_v2  ;;  %2364 = vmatprep.mubr.msk.bf16.mxu0 %vm2921_vm7, %v3807_v0 }
 0x39d   :  { %2350 = vmatprep.subr.bf16.mxu0 %v3807_v0  ;;  %1327 = vmatpush1.bf16.msra.mxu1 %v3064_v1 }
 0x39e   :  { %1328 = vmatprep.subr.bf16.mxu1 %v3071_v4  ;;  %1358 = vmatprep.mubr.bf16.mxu1 %v3806_v55 }
 0x3a0   :  { %2351 = vmatpush3.bf16.msra.mxu0 %v3222_v33 }
 0x3a1   :  { %2352 = vmatprep.subr.bf16.mxu0 %v3807_v0  ;;  %1329 = vmatpush1.bf16.msra.mxu1 %v3075_v7 }
 0x3a2   :  { %1330 = vmatprep.subr.bf16.mxu1 %v3083_v9 }
 0x3a4   :  { %2353 = vmatpush3.bf16.msra.mxu0 %v3231_v34 }
 0x3a5   :  { %2354 = vmatprep.subr.bf16.mxu0 %v3807_v0  ;;  %1331 = vmatpush1.bf16.msra.mxu1 %v3089_v11 }
 0x3a6   :  { %1332 = vmatprep.subr.bf16.mxu1 %v3095_v13 }
 0x3a8   :  { %2355 = vmatpush3.bf16.msra.mxu0 %v3237_v40 }
 0x3a9   :  { %2356 = vmatprep.subr.bf16.mxu0 %v3807_v0  ;;  %1333 = vmatpush1.bf16.msra.mxu1 %v3101_v15 }
 0x3aa   :  { %1334 = vmatprep.subr.bf16.mxu1 %v3109_v17 }
 0x3ac   :  { %2357 = vmatpush3.bf16.msra.mxu0 %v3243_v41 }
 0x3ad   :  { %2358 = vmatprep.subr.bf16.mxu0 %v3807_v0  ;;  %1335 = vmatpush1.bf16.msra.mxu1 %v3113_v19 }
 0x3ae   :  { %1336 = vmatprep.subr.bf16.mxu1 %v3117_v21 }
 0x3b0   :  { %2359 = vmatpush3.bf16.msra.mxu0 %v3249_v38 }
 0x3b1   :  { %2360 = vmatprep.subr.bf16.mxu0 %v3807_v0  ;;  %1337 = vmatpush1.bf16.msra.mxu1 %v3127_v23 }
 0x3b2   :  { %1338 = vmatprep.subr.bf16.mxu1 %v3133_v25 }
 0x3b4   :  { %2361 = vmatpush3.bf16.msra.mxu0 %v3255_v42 }
 0x3b5   :  { %2362 = vmatprep.subr.bf16.mxu0 %v3807_v0  ;;  %1339 = vmatpush1.bf16.msra.mxu1 %v3139_v27 }
 0x3b6   :  { %1340 = vmatprep.subr.bf16.mxu1 %v3145_v29 }
 0x3b8   :  { %2363 = vmatpush3.bf16.msra.mxu0 %v3261_v44 }
 0x3b9   :  { %1367 = vmatprep.subr.bf16.mxu0 %v3059_v60  ;;  %1341 = vmatpush1.bf16.msra.mxu1 %v3151_v31  ;;  %v3808_v60 = vld [vmem:[#allocation19_spill] sm:$0xff] }
 0x3ba   :  { %2368 = vmatprep.subr.bf16.mxu1 %v3807_v0 }
 0x3bb   :  { %2365 = vmatmul.mubr.bf16.vlgmr.msra.gmra.mrb[24].mxu0 %v1152_v56 }
 0x3bc   :  { %1368 = vmatpush1.bf16.msra.mxu0 %v3069_v3  ;;  %1399 = vmatprep.mubr.bf16.mxu0 %v3806_v55 }
 0x3bd   :  { %1369 = vmatprep.subr.bf16.mxu0 %v3073_v6 }
 0x3c0   :  { %1370 = vmatpush1.bf16.msra.mxu0 %v3079_v8 }
 0x3c1   :  { %1371 = vmatprep.subr.bf16.mxu0 %v3085_v10 }
 0x3c4   :  { %1372 = vmatpush1.bf16.msra.mxu0 %v3093_v12 }
 0x3c5   :  { %1373 = vmatprep.subr.bf16.mxu0 %v3099_v14 }
 0x3c8   :  { %1374 = vmatpush1.bf16.msra.mxu0 %v3105_v16 }
 0x3c9   :  { %1375 = vmatprep.subr.bf16.mxu0 %v3111_v18 }
 0x3cc   :  { %1376 = vmatpush1.bf16.msra.mxu0 %v3115_v20 }
 0x3cd   :  { %1377 = vmatprep.subr.bf16.mxu0 %v3119_v22 }
 0x3d0   :  { %1378 = vmatpush1.bf16.msra.mxu0 %v3129_v24 }
 0x3d1   :  { %1379 = vmatprep.subr.bf16.mxu0 %v3135_v26 }
 0x3d4   :  { %1380 = vmatpush1.bf16.msra.mxu0 %v3141_v28 }
 0x3d5   :  { %1381 = vmatprep.subr.bf16.mxu0 %v3147_v30 }
 0x3d8   :  { %1382 = vmatpush1.bf16.msra.mxu0 %v3153_v32 }
 0x3d9   :  { %1496 = vmatprep.subr.bf16.mxu0 %v3808_v60 }
 0x46e   :  { %v1188_v1 = vpop.f32.mrb[20].mxu0  ;;  %v1229_v3 = vpop.f32.mrb[20].mxu1 }
 0x46f   :  { %v1281_v4 = vrot.slane %v1188_v1, 5  ;;  %v1190_v6 = vpop.f32.mrb[21].mxu0  ;;  %v1231_v7 = vpop.f32.mrb[21].mxu1  ;;  %v1283_v61 = vrot.slane %v1229_v3, 5 }
 0x470   :  { %v1282_v8 = vrot.slane %v1190_v6, 5  ;;  %v1192_v9 = vpop.f32.mrb[22].mxu0  ;;  %v1233_v10 = vpop.f32.mrb[22].mxu1  ;;  %v1284_v20 = vrot.slane %v1231_v7, 5 }
 0x471   :  { %v1289_v11 = vadd.f32 %v1281_v4, %v3201_v52  ;;  %v1193_v12 = vpop.f32.mrb[23].mxu0  ;;  %v1234_v13 = vpop.f32.mrb[23].mxu1  ;;  %v1291_v50 = vadd.f32 %v1283_v61, %v3210_v43  ;;  %v3507_v61 = vld [vmem:[#allocation9 + $0xa8] ss:$20 sps:$4 sm:$0xff]  }
 0x472   :  { %v1290_v14 = vadd.f32 %v1282_v8, %v3203_v53  ;;  %v1292_v22 = vadd.f32 %v1284_v20, %v3207_v36  ;;  %v3454_v20 = vld [vmem:[#allocation9 + $0x50] ss:$20 sps:$4 sm:$0xff]  }
 0x473   :  { %v2221_v16 = vmul.f32 -1.442695, %v1289_v11 }
 0x474   :  { %v2222_v18 = vmul.f32 -1.442695, %v1290_v14  ;;  %v2223_v46 = vmul.f32 -1.442695, %v1292_v22  ;;  %v3437_v14 = vld [vmem:[#allocation9] ss:$20 sps:$4 sm:$0xff]  }
 0x475   :  { %2636 = vpow2.f32 %v2221_v16  ;;  %v3446_v16 = vld [vmem:[#allocation9 + $0x28] ss:$20 sps:$4 sm:$0xff]  }
 0x476   :  { %2638 = vpow2.f32 %v2222_v18  ;;  %v3449_v18 = vld [vmem:[#allocation9 + $0x54] ss:$20 sps:$4 sm:$0xff]   ;;  %v3457_v22 = vld [vmem:[#allocation9 + $0x7c] ss:$20 sps:$4 sm:$0xff]  }
 0x477   :  { %2640 = vpow2.f32 %v2223_v46  ;;  %v3510_v46 = vld [vmem:[#allocation9 + $0xd4] ss:$20 sps:$4 sm:$0xff]  }
 0x478   :  { %2642 = vtanh.f32 %v1291_v50  ;;  %v3518_v50 = vld [vmem:[#allocation9 + $0x4] ss:$20 sps:$4 sm:$0xff]  }
 0x47f   :  { %v2637_v54 = vpop.eup %2636 }
 0x480   :  { %v2639_v39 = vpop.eup %2638  ;;  %v1296_v57 = vadd.f32 1.0, %v2637_v54 }
 0x481   :  { %v1302_v47 = vadd.f32 1.0, %v2639_v39  ;;  %v2641_v51 = vpop.eup %2640 }
 0x482   :  { %2644 = vrcp.f32 %v1296_v57  ;;  %v2643_v45 = vpop.eup %2642  ;;  %v1309_v62 = vadd.f32 1.0, %v2641_v51 }
 0x483   :  { %2646 = vrcp.f32 %v1302_v47 }
 0x484   :  { %2648 = vrcp.f32 %v1309_v62 }
 0x48c   :  { %v2645_v63 = vpop.eup %2644 }
 0x48d   :  { %v2647_v37 = vpop.eup %2646  ;;  %v1316_v58 = vmul.f32 %v2645_v63, %v2643_v45 }
 0x48e   :  { %v1315_v5 = vmul.f32 %v2647_v37, %v1313_v59  ;;  %v1270_v56 = vpop.f32.mrb[24].mxu0  ;;  %v2649_v49 = vpop.eup %2648 }
 0x48f   :  { %v1276_v60 = vadd.f32 %v1270_v56, %v3357_v35  ;;  %v2366_v1 = vpop.f32.mrb[25].mxu0 }
 0x490   :  { %v3426_v3 = vadd.f32 %v1316_v58, %v1315_v5  ;;  %v1273_v4 = vpop.f32.mrb[26].mxu0 }
 0x491   :  { %v2055_v6 = vrot.slane %v1276_v60, 6  ;;  %v2367_v7 = vpop.f32.mrb[27].mxu0 }
 0x492   :  { %2650 = vtanh.f32 %v3426_v3 }
 0x493   :  { %v3431_v8 = vsel %vm133_vm1, %v3366_v48, %v2055_v6  ;;  %v3440_v48 = vld [vmem:[#allocation9 + $0x2c] ss:$20 sps:$4 sm:$0xff]  }
 0x49c   :  { %v2651_v9 = vpop.eup %2650 }
 0x49d   :  { %v1319_v10 = vmul.f32 %v2651_v9, %v2649_v49 }
 0x49f   :  { %v1320_v11 = vpack.c.bf16 %v1319_v10, %v1319_v10 }
 0x4a1   :  { %v1322_v12 = vshrl.u32 %v1320_v11, 16  ;;  %v1485_v11 = vrot.slane %v3426_v3, 7 }
 0x4a3   :  { %v1324_v13 = vrot.slane %v1322_v12, 1 }
 0x4a5   :  { %1359 = vmatmul.mubr.bf16.vlgmr.msra.gmra.mrb[24].mxu1 %v1324_v13  ;;  %1400 = vmatmul.mubr.bf16.vlgmr.msra.gmra.mrb[28].mxu0 %v1324_v13 }
 0x4a6   :  { %2369 = vmatpush3.bf16.msra.mxu1 %v3219_v2  ;;  %2384 = vmatprep.mubr.msk.bf16.mxu1 %vm2921_vm7, %v3807_v0 }
 0x4a7   :  { %2370 = vmatprep.subr.bf16.mxu1 %v3807_v0  ;;  %1497 = vmatpush1.bf16.msra.mxu0 %v3437_v14 }
 0x4a8   :  { %1498 = vmatprep.subr.bf16.mxu0 %v3440_v48  ;;  %1528 = vmatprep.mubr.bf16.mxu0 %v3806_v55 }
 0x4aa   :  { %2371 = vmatpush3.bf16.msra.mxu1 %v3222_v33 }
 0x4ab   :  { %2372 = vmatprep.subr.bf16.mxu1 %v3807_v0  ;;  %1499 = vmatpush1.bf16.msra.mxu0 %v3446_v16 }
 0x4ac   :  { %1500 = vmatprep.subr.bf16.mxu0 %v3449_v18 }
 0x4ae   :  { %2373 = vmatpush3.bf16.msra.mxu1 %v3231_v34 }
 0x4af   :  { %2374 = vmatprep.subr.bf16.mxu1 %v3807_v0  ;;  %1501 = vmatpush1.bf16.msra.mxu0 %v3454_v20 }
 0x4b0   :  { %1502 = vmatprep.subr.bf16.mxu0 %v3457_v22 }
 0x4b2   :  { %2375 = vmatpush3.bf16.msra.mxu1 %v3237_v40 }
 0x4b3   :  { %2376 = vmatprep.subr.bf16.mxu1 %v3807_v0  ;;  %1503 = vmatpush1.bf16.msra.mxu0 %v3101_v15  ;;  %v3477_v15 = vld [vmem:[#allocation9 + $0xc] ss:$20 sps:$4 sm:$0xff]  }
 0x4b4   :  { %1504 = vmatprep.subr.bf16.mxu0 %v3109_v17  ;;  %v3482_v17 = vld [vmem:[#allocation9 + $0x8] ss:$20 sps:$4 sm:$0xff]  }
 0x4b6   :  { %2377 = vmatpush3.bf16.msra.mxu1 %v3243_v41 }
 0x4b7   :  { %2378 = vmatprep.subr.bf16.mxu1 %v3807_v0  ;;  %1505 = vmatpush1.bf16.msra.mxu0 %v3113_v19  ;;  %v3486_v19 = vld [vmem:[#allocation9 + $0x34] ss:$20 sps:$4 sm:$0xff]  }
 0x4b8   :  { %1506 = vmatprep.subr.bf16.mxu0 %v3117_v21  ;;  %v3489_v21 = vld [vmem:[#allocation9 + $0x30] ss:$20 sps:$4 sm:$0xff]  }
 0x4ba   :  { %2379 = vmatpush3.bf16.msra.mxu1 %v3249_v38 }
 0x4bb   :  { %2380 = vmatprep.subr.bf16.mxu1 %v3807_v0  ;;  %1507 = vmatpush1.bf16.msra.mxu0 %v3127_v23  ;;  %v3492_v23 = vld [vmem:[#allocation9 + $0x5c] ss:$20 sps:$4 sm:$0xff]  }
 0x4bc   :  { %1508 = vmatprep.subr.bf16.mxu0 %v3133_v25  ;;  %v3495_v25 = vld [vmem:[#allocation9 + $0x58] ss:$20 sps:$4 sm:$0xff]  }
 0x4be   :  { %2381 = vmatpush3.bf16.msra.mxu1 %v3255_v42 }
 0x4bf   :  { %2382 = vmatprep.subr.bf16.mxu1 %v3807_v0  ;;  %1509 = vmatpush1.bf16.msra.mxu0 %v3139_v27  ;;  %v3498_v27 = vld [vmem:[#allocation9 + $0x84] ss:$20 sps:$4 sm:$0xff]  }
 0x4c0   :  { %1510 = vmatprep.subr.bf16.mxu0 %v3145_v29  ;;  %v3501_v29 = vld [vmem:[#allocation9 + $0x80] ss:$20 sps:$4 sm:$0xff]  }
 0x4c2   :  { %2383 = vmatpush3.bf16.msra.mxu1 %v3261_v44 }
 0x4c3   :  { %1537 = vmatprep.subr.bf16.mxu1 %v3477_v15  ;;  %1511 = vmatpush1.bf16.msra.mxu0 %v3151_v31  ;;  %v3504_v31 = vld [vmem:[#allocation9 + $0xac] ss:$20 sps:$4 sm:$0xff]  }
 0x4c4   :  { %2388 = vmatprep.subr.bf16.mxu0 %v3807_v0 }
 0x4c5   :  { %2385 = vmatmul.mubr.bf16.vlgmr.msra.gmra.mrb[28].mxu1 %v1324_v13 }
 0x4c6   :  { %1538 = vmatpush1.bf16.msra.mxu1 %v3482_v17  ;;  %1569 = vmatprep.mubr.bf16.mxu1 %v3806_v55 }
 0x4c7   :  { %1539 = vmatprep.subr.bf16.mxu1 %v3486_v19 }
 0x4ca   :  { %1540 = vmatpush1.bf16.msra.mxu1 %v3489_v21 }
 0x4cb   :  { %1541 = vmatprep.subr.bf16.mxu1 %v3492_v23 }
 0x4ce   :  { %1542 = vmatpush1.bf16.msra.mxu1 %v3495_v25 }
 0x4cf   :  { %1543 = vmatprep.subr.bf16.mxu1 %v3498_v27 }
 0x4d2   :  { %1544 = vmatpush1.bf16.msra.mxu1 %v3501_v29 }
 0x4d3   :  { %1545 = vmatprep.subr.bf16.mxu1 %v3504_v31 }
 0x4d6   :  { %1546 = vmatpush1.bf16.msra.mxu1 %v3507_v61 }
 0x4d7   :  { %1547 = vmatprep.subr.bf16.mxu1 %v3510_v46 }
 0x4da   :  { %1548 = vmatpush1.bf16.msra.mxu1 %v3129_v24 }
 0x4db   :  { %1549 = vmatprep.subr.bf16.mxu1 %v3135_v26 }
 0x4de   :  { %1550 = vmatpush1.bf16.msra.mxu1 %v3141_v28 }
 0x4df   :  { %1551 = vmatprep.subr.bf16.mxu1 %v3147_v30 }
 0x4e2   :  { %1552 = vmatpush1.bf16.msra.mxu1 %v3153_v32 }
 0x4e3   :  { %1668 = vmatprep.subr.bf16.mxu1 %v3518_v50 }
 0x578   :  { %v1360_v54 = vpop.f32.mrb[24].mxu1  ;;  %v1401_v39 = vpop.f32.mrb[28].mxu0 }
 0x579   :  { %v1453_v57 = vrot.slane %v1360_v54, 4  ;;  %v1362_v47 = vpop.f32.mrb[25].mxu1  ;;  %v1403_v51 = vpop.f32.mrb[29].mxu0  ;;  %v1455_v5 = vrot.slane %v1401_v39, 4 }
 0x57a   :  { %v1454_v45 = vrot.slane %v1362_v47, 4  ;;  %v1364_v63 = vpop.f32.mrb[26].mxu1  ;;  %v1405_v24 = vpop.f32.mrb[30].mxu0  ;;  %v1456_v58 = vrot.slane %v1403_v51, 4 }
 0x57b   :  { %v1461_v26 = vadd.f32 %v1453_v57, %v3201_v52  ;;  %v1365_v59 = vpop.f32.mrb[27].mxu1  ;;  %v1406_v28 = vpop.f32.mrb[31].mxu0  ;;  %v1463_v60 = vadd.f32 %v1455_v5, %v3210_v43  ;;  %v3604_v5 = vld [vmem:[#allocation9 + $0xf8] ss:$20 sps:$4 sm:$0xff]  }
 0x57c   :  { %v1462_v30 = vadd.f32 %v1454_v45, %v3203_v53  ;;  %v1464_v62 = vadd.f32 %v1456_v58, %v3207_v36  ;;  %v3570_v58 = vld [vmem:[#allocation9 + $0xf4] ss:$20 sps:$4 sm:$0xff]  }
 0x57d   :  { %v2224_v37 = vmul.f32 -1.442695, %v1461_v26 }
 0x57e   :  { %v2225_v32 = vmul.f32 -1.442695, %v1462_v30  ;;  %v2226_v56 = vmul.f32 -1.442695, %v1464_v62  ;;  %v3578_v62 = vld [vmem:[#allocation9 + $0x11c] ss:$20 sps:$4 sm:$0xff]  }
 0x57f   :  { %2652 = vpow2.f32 %v2224_v37 }
 0x580   :  { %2654 = vpow2.f32 %v2225_v32 }
 0x581   :  { %2656 = vpow2.f32 %v2226_v56  ;;  %v3607_v56 = vld [vmem:[#allocation9 + $0x124] ss:$20 sps:$4 sm:$0xff]  }
 0x582   :  { %2658 = vtanh.f32 %v1463_v60  ;;  %v3610_v60 = vld [vmem:[#allocation9 + $0x120] ss:$20 sps:$4 sm:$0xff]  }
 0x589   :  { %v2653_v1 = vpop.eup %2652 }
 0x58a   :  { %v2655_v4 = vpop.eup %2654  ;;  %v1468_v6 = vadd.f32 1.0, %v2653_v1 }
 0x58b   :  { %v1474_v7 = vadd.f32 1.0, %v2655_v4  ;;  %v2657_v49 = vpop.eup %2656 }
 0x58c   :  { %2660 = vrcp.f32 %v1468_v6  ;;  %v2659_v9 = vpop.eup %2658  ;;  %v1481_v54 = vadd.f32 1.0, %v2657_v49 }
 0x58d   :  { %2662 = vrcp.f32 %v1474_v7 }
 0x58e   :  { %2664 = vrcp.f32 %v1481_v54 }
 0x596   :  { %v2661_v10 = vpop.eup %2660 }
 0x597   :  { %v2663_v12 = vpop.eup %2662  ;;  %v1488_v13 = vmul.f32 %v2661_v10, %v2659_v9 }
 0x598   :  { %v1487_v39 = vmul.f32 %v2663_v12, %v1485_v11  ;;  %v1442_v57 = vpop.f32.mrb[28].mxu1  ;;  %v2665_v3 = vpop.eup %2664 }
 0x599   :  { %v1448_v47 = vadd.f32 %v1442_v57, %v3357_v35  ;;  %v2386_v51 = vpop.f32.mrb[29].mxu1 }
 0x59a   :  { %v3527_v45 = vadd.f32 %v1488_v13, %v1487_v39  ;;  %v1445_v63 = vpop.f32.mrb[30].mxu1 }
 0x59b   :  { %v2058_v24 = vrot.slane %v1448_v47, 5  ;;  %v2387_v26 = vpop.f32.mrb[31].mxu1 }
 0x59c   :  { %2666 = vtanh.f32 %v3527_v45 }
 0x59d   :  { %v3532_v59 = vsel %vm135_vm2, %v3431_v8, %v2058_v24  ;;  %v3562_v8 = vld [vmem:[#allocation9 + $0xcc] ss:$20 sps:$4 sm:$0xff]  }
 0x5a6   :  { %v2667_v28 = vpop.eup %2666 }
 0x5a7   :  { %v1491_v30 = vmul.f32 %v2667_v28, %v2665_v3 }
 0x5a9   :  { %v1492_v37 = vpack.c.bf16 %v1491_v30, %v1491_v30 }
 0x5ab   :  { %v1494_v32 = vrot.slane %v1492_v37, 2 }
 0x5ad   :  { %1529 = vmatmul.mubr.bf16.vlgmr.msra.gmra.mrb[32].mxu0 %v1494_v32  ;;  %1570 = vmatmul.mubr.bf16.vlgmr.msra.gmra.mrb[32].mxu1 %v1494_v32 }
 0x5ae   :  { %2389 = vmatpush3.bf16.msra.mxu0 %v3219_v2  ;;  %2404 = vmatprep.mubr.msk.bf16.mxu0 %vm2921_vm7, %v3807_v0  ;;  %v3551_v2 = vld [vmem:[#allocation9 + $0x78] ss:$20 sps:$4 sm:$0xff]  }
 0x5af   :  { %2390 = vmatprep.subr.bf16.mxu0 %v3807_v0  ;;  %1669 = vmatpush1.bf16.msra.mxu1 %v3437_v14 }
 0x5b0   :  { %1670 = vmatprep.subr.bf16.mxu1 %v3440_v48  ;;  %1700 = vmatprep.mubr.bf16.mxu1 %v3806_v55 }
 0x5b2   :  { %2391 = vmatpush3.bf16.msra.mxu0 %v3222_v33  ;;  %v3554_v33 = vld [vmem:[#allocation9 + $0xa4] ss:$20 sps:$4 sm:$0xff]  }
 0x5b3   :  { %2392 = vmatprep.subr.bf16.mxu0 %v3807_v0  ;;  %1671 = vmatpush1.bf16.msra.mxu1 %v3446_v16 }
 0x5b4   :  { %1672 = vmatprep.subr.bf16.mxu1 %v3449_v18 }
 0x5b6   :  { %2393 = vmatpush3.bf16.msra.mxu0 %v3231_v34  ;;  %v3559_v34 = vld [vmem:[#allocation9 + $0xa0] ss:$20 sps:$4 sm:$0xff]  }
 0x5b7   :  { %2394 = vmatprep.subr.bf16.mxu0 %v3807_v0  ;;  %1673 = vmatpush1.bf16.msra.mxu1 %v3454_v20 }
 0x5b8   :  { %1674 = vmatprep.subr.bf16.mxu1 %v3457_v22 }
 0x5ba   :  { %2395 = vmatpush3.bf16.msra.mxu0 %v3237_v40  ;;  %v3567_v40 = vld [vmem:[#allocation9 + $0xc8] ss:$20 sps:$4 sm:$0xff]  }
 0x5bb   :  { %2396 = vmatprep.subr.bf16.mxu0 %v3807_v0  ;;  %1675 = vmatpush1.bf16.msra.mxu1 %v3551_v2 }
 0x5bc   :  { %1676 = vmatprep.subr.bf16.mxu1 %v3554_v33 }
 0x5be   :  { %2397 = vmatpush3.bf16.msra.mxu0 %v3243_v41  ;;  %v3575_v41 = vld [vmem:[#allocation9 + $0xf0] ss:$20 sps:$4 sm:$0xff]  }
 0x5bf   :  { %2398 = vmatprep.subr.bf16.mxu0 %v3807_v0  ;;  %1677 = vmatpush1.bf16.msra.mxu1 %v3559_v34 }
 0x5c0   :  { %1678 = vmatprep.subr.bf16.mxu1 %v3562_v8 }
 0x5c2   :  { %2399 = vmatpush3.bf16.msra.mxu0 %v3249_v38  ;;  %v3583_v38 = vld [vmem:[#allocation9 + $0x118] ss:$20 sps:$4 sm:$0xff]  }
 0x5c3   :  { %2400 = vmatprep.subr.bf16.mxu0 %v3807_v0  ;;  %1679 = vmatpush1.bf16.msra.mxu1 %v3567_v40 }
 0x5c4   :  { %1680 = vmatprep.subr.bf16.mxu1 %v3570_v58 }
 0x5c6   :  { %2401 = vmatpush3.bf16.msra.mxu0 %v3255_v42  ;;  %v3598_v42 = vld [vmem:[#allocation9 + $0xd0] ss:$20 sps:$4 sm:$0xff]  }
 0x5c7   :  { %2402 = vmatprep.subr.bf16.mxu0 %v3807_v0  ;;  %1681 = vmatpush1.bf16.msra.mxu1 %v3575_v41 }
 0x5c8   :  { %1682 = vmatprep.subr.bf16.mxu1 %v3578_v62 }
 0x5ca   :  { %2403 = vmatpush3.bf16.msra.mxu0 %v3261_v44  ;;  %v3601_v44 = vld [vmem:[#allocation9 + $0xfc] ss:$20 sps:$4 sm:$0xff]  }
 0x5cb   :  { %1709 = vmatprep.subr.bf16.mxu0 %v3477_v15  ;;  %1683 = vmatpush1.bf16.msra.mxu1 %v3583_v38 }
 0x5cc   :  { %2408 = vmatprep.subr.bf16.mxu1 %v3807_v0 }
 0x5cd   :  { %2405 = vmatmul.mubr.bf16.vlgmr.msra.gmra.mrb[36].mxu0 %v1494_v32 }
 0x5ce   :  { %1710 = vmatpush1.bf16.msra.mxu0 %v3482_v17  ;;  %1741 = vmatprep.mubr.bf16.mxu0 %v3806_v55 }
 0x5cf   :  { %1711 = vmatprep.subr.bf16.mxu0 %v3486_v19 }
 0x5d2   :  { %1712 = vmatpush1.bf16.msra.mxu0 %v3489_v21 }
 0x5d3   :  { %1713 = vmatprep.subr.bf16.mxu0 %v3492_v23 }
 0x5d6   :  { %1714 = vmatpush1.bf16.msra.mxu0 %v3495_v25 }
 0x5d7   :  { %1715 = vmatprep.subr.bf16.mxu0 %v3498_v27 }
 0x5da   :  { %1716 = vmatpush1.bf16.msra.mxu0 %v3501_v29 }
 0x5db   :  { %1717 = vmatprep.subr.bf16.mxu0 %v3504_v31 }
 0x5de   :  { %1718 = vmatpush1.bf16.msra.mxu0 %v3507_v61 }
 0x5df   :  { %1719 = vmatprep.subr.bf16.mxu0 %v3510_v46 }
 0x5e2   :  { %1720 = vmatpush1.bf16.msra.mxu0 %v3598_v42 }
 0x5e3   :  { %1721 = vmatprep.subr.bf16.mxu0 %v3601_v44 }
 0x5e6   :  { %1722 = vmatpush1.bf16.msra.mxu0 %v3604_v5 }
 0x5e7   :  { %1723 = vmatprep.subr.bf16.mxu0 %v3607_v56 }
 0x5ea   :  { %1724 = vmatpush1.bf16.msra.mxu0 %v3610_v60 }
 0x5eb   :  { %1838 = vmatprep.subr.bf16.mxu0 %v3518_v50 }
 0x680   :  { %v1530_v1 = vpop.f32.mrb[32].mxu0  ;;  %v1571_v4 = vpop.f32.mrb[32].mxu1 }
 0x681   :  { %v1623_v6 = vrot.slane %v1530_v1, 3  ;;  %v1532_v7 = vpop.f32.mrb[33].mxu0  ;;  %v1573_v49 = vpop.f32.mrb[33].mxu1  ;;  %v1625_v63 = vrot.slane %v1571_v4, 3 }
 0x682   :  { %v1624_v9 = vrot.slane %v1532_v7, 3  ;;  %v1534_v10 = vpop.f32.mrb[34].mxu0  ;;  %v1575_v11 = vpop.f32.mrb[34].mxu1  ;;  %v1626_v51 = vrot.slane %v1573_v49, 3  ;;  %v1655_v7 = vrot.slane %v3527_v45, 7 }
 0x683   :  { %v1631_v12 = vadd.f32 %v1623_v6, %v3201_v52  ;;  %v1535_v13 = vpop.f32.mrb[35].mxu0  ;;  %v1576_v54 = vpop.f32.mrb[35].mxu1  ;;  %v1633_v26 = vadd.f32 %v1625_v63, %v3210_v43 }
 0x684   :  { %v1632_v39 = vadd.f32 %v1624_v9, %v3203_v53  ;;  %v1634_v50 = vadd.f32 %v1626_v51, %v3207_v36 }
 0x685   :  { %v2227_v57 = vmul.f32 -1.442695, %v1631_v12 }
 0x686   :  { %v2228_v47 = vmul.f32 -1.442695, %v1632_v39  ;;  %v2229_v24 = vmul.f32 -1.442695, %v1634_v50 }
 0x687   :  { %2668 = vpow2.f32 %v2227_v57 }
 0x688   :  { %2670 = vpow2.f32 %v2228_v47 }
 0x689   :  { %2672 = vpow2.f32 %v2229_v24 }
 0x68a   :  { %2674 = vtanh.f32 %v1633_v26 }
 0x691   :  { %v2669_v3 = vpop.eup %2668 }
 0x692   :  { %v2671_v28 = vpop.eup %2670  ;;  %v1638_v30 = vadd.f32 1.0, %v2669_v3 }
 0x693   :  { %v1644_v37 = vadd.f32 1.0, %v2671_v28  ;;  %v2673_v32 = vpop.eup %2672  ;;  %v3627_v28 = vld [vmem:[#allocation9 + $0x10] ss:$20 sps:$4 sm:$0xff]  }
 0x694   :  { %2676 = vrcp.f32 %v1638_v30  ;;  %v2675_v1 = vpop.eup %2674  ;;  %v1651_v10 = vadd.f32 1.0, %v2673_v32  ;;  %v3642_v30 = vld [vmem:[#allocation9 + $0x60] ss:$20 sps:$4 sm:$0xff]  }
 0x695   :  { %2678 = vrcp.f32 %v1644_v37 }
 0x696   :  { %2680 = vrcp.f32 %v1651_v10 }
 0x69e   :  { %v2677_v6 = vpop.eup %2676 }
 0x69f   :  { %v2679_v49 = vpop.eup %2678  ;;  %v1658_v9 = vmul.f32 %v2677_v6, %v2675_v1 }
 0x6a0   :  { %v1657_v4 = vmul.f32 %v2679_v49, %v1655_v7  ;;  %v1612_v11 = vpop.f32.mrb[36].mxu0  ;;  %v2681_v45 = vpop.eup %2680 }
 0x6a1   :  { %v1618_v12 = vadd.f32 %v1612_v11, %v3357_v35  ;;  %v2406_v13 = vpop.f32.mrb[37].mxu0 }
 0x6a2   :  { %v3620_v54 = vadd.f32 %v1658_v9, %v1657_v4  ;;  %v1615_v39 = vpop.f32.mrb[38].mxu0 }
 0x6a3   :  { %v2061_v57 = vrot.slane %v1618_v12, 4  ;;  %v2407_v47 = vpop.f32.mrb[39].mxu0 }
 0x6a4   :  { %2682 = vtanh.f32 %v3620_v54 }
 0x6a5   :  { %v3625_v51 = vsel %vm137_vm3, %v3532_v59, %v2061_v57  ;;  %v3636_v59 = vld [vmem:[#allocation9 + $0x38] ss:$20 sps:$4 sm:$0xff]  }
 0x6ae   :  { %v2683_v50 = vpop.eup %2682 }
 0x6af   :  { %v1661_v63 = vmul.f32 %v2683_v50, %v2681_v45 }
 0x6b1   :  { %v1662_v24 = vpack.c.bf16 %v1661_v63, %v1661_v63 }
 0x6b3   :  { %v1664_v26 = vshrl.u32 %v1662_v24, 16 }
 0x6b5   :  { %v1666_v3 = vrot.slane %v1664_v26, 2 }
 0x6b7   :  { %1701 = vmatmul.mubr.bf16.vlgmr.msra.gmra.mrb[36].mxu1 %v1666_v3  ;;  %1742 = vmatmul.mubr.bf16.vlgmr.msra.gmra.mrb[40].mxu0 %v1666_v3 }
 0x6b8   :  { %2409 = vmatpush3.bf16.msra.mxu1 %v3627_v28  ;;  %2424 = vmatprep.mubr.msk.bf16.mxu1 %vm2921_vm7, %v3807_v0 }
 0x6b9   :  { %2410 = vmatprep.subr.bf16.mxu1 %v3807_v0  ;;  %1839 = vmatpush1.bf16.msra.mxu0 %v3437_v14  ;;  %v3648_v14 = vld [vmem:[#allocation9 + $0x88] ss:$20 sps:$4 sm:$0xff]  }
 0x6ba   :  { %1840 = vmatprep.subr.bf16.mxu0 %v3440_v48  ;;  %1870 = vmatprep.mubr.bf16.mxu0 %v3806_v55  ;;  %v3654_v48 = vld [vmem:[#allocation9 + $0xb0] ss:$20 sps:$4 sm:$0xff]  }
 0x6bc   :  { %2411 = vmatpush3.bf16.msra.mxu1 %v3636_v59 }
 0x6bd   :  { %2412 = vmatprep.subr.bf16.mxu1 %v3807_v0  ;;  %1841 = vmatpush1.bf16.msra.mxu0 %v3446_v16  ;;  %v3660_v16 = vld [vmem:[#allocation9 + $0xd8] ss:$20 sps:$4 sm:$0xff]  }
 0x6be   :  { %1842 = vmatprep.subr.bf16.mxu0 %v3449_v18  ;;  %v3666_v18 = vld [vmem:[#allocation9 + $0x100] ss:$20 sps:$4 sm:$0xff]  }
 0x6c0   :  { %2413 = vmatpush3.bf16.msra.mxu1 %v3642_v30 }
 0x6c1   :  { %2414 = vmatprep.subr.bf16.mxu1 %v3807_v0  ;;  %1843 = vmatpush1.bf16.msra.mxu0 %v3454_v20  ;;  %v3672_v20 = vld [vmem:[#allocation9 + $0x128] ss:$20 sps:$4 sm:$0xff]  }
 0x6c2   :  { %1844 = vmatprep.subr.bf16.mxu0 %v3457_v22 }
 0x6c4   :  { %2415 = vmatpush3.bf16.msra.mxu1 %v3648_v14 }
 0x6c5   :  { %2416 = vmatprep.subr.bf16.mxu1 %v3807_v0  ;;  %1845 = vmatpush1.bf16.msra.mxu0 %v3551_v2 }
 0x6c6   :  { %1846 = vmatprep.subr.bf16.mxu0 %v3554_v33 }
 0x6c8   :  { %2417 = vmatpush3.bf16.msra.mxu1 %v3654_v48 }
 0x6c9   :  { %2418 = vmatprep.subr.bf16.mxu1 %v3807_v0  ;;  %1847 = vmatpush1.bf16.msra.mxu0 %v3559_v34 }
 0x6ca   :  { %1848 = vmatprep.subr.bf16.mxu0 %v3562_v8 }
 0x6cc   :  { %2419 = vmatpush3.bf16.msra.mxu1 %v3660_v16 }
 0x6cd   :  { %2420 = vmatprep.subr.bf16.mxu1 %v3807_v0  ;;  %1849 = vmatpush1.bf16.msra.mxu0 %v3567_v40 }
 0x6ce   :  { %1850 = vmatprep.subr.bf16.mxu0 %v3570_v58 }
 0x6d0   :  { %2421 = vmatpush3.bf16.msra.mxu1 %v3666_v18 }
 0x6d1   :  { %2422 = vmatprep.subr.bf16.mxu1 %v3807_v0  ;;  %1851 = vmatpush1.bf16.msra.mxu0 %v3575_v41 }
 0x6d2   :  { %1852 = vmatprep.subr.bf16.mxu0 %v3578_v62 }
 0x6d4   :  { %2423 = vmatpush3.bf16.msra.mxu1 %v3672_v20 }
 0x6d5   :  { %1879 = vmatprep.subr.bf16.mxu1 %v3477_v15  ;;  %1853 = vmatpush1.bf16.msra.mxu0 %v3583_v38 }
 0x6d6   :  { %2428 = vmatprep.subr.bf16.mxu0 %v3807_v0 }
 0x6d7   :  { %2425 = vmatmul.mubr.bf16.vlgmr.msra.gmra.mrb[40].mxu1 %v1666_v3 }
 0x6d8   :  { %1880 = vmatpush1.bf16.msra.mxu1 %v3482_v17  ;;  %1911 = vmatprep.mubr.bf16.mxu1 %v3806_v55 }
 0x6d9   :  { %1881 = vmatprep.subr.bf16.mxu1 %v3486_v19 }
 0x6dc   :  { %1882 = vmatpush1.bf16.msra.mxu1 %v3489_v21 }
 0x6dd   :  { %1883 = vmatprep.subr.bf16.mxu1 %v3492_v23 }
 0x6e0   :  { %1884 = vmatpush1.bf16.msra.mxu1 %v3495_v25 }
 0x6e1   :  { %1885 = vmatprep.subr.bf16.mxu1 %v3498_v27 }
 0x6e4   :  { %1886 = vmatpush1.bf16.msra.mxu1 %v3501_v29 }
 0x6e5   :  { %1887 = vmatprep.subr.bf16.mxu1 %v3504_v31 }
 0x6e8   :  { %1888 = vmatpush1.bf16.msra.mxu1 %v3507_v61 }
 0x6e9   :  { %1889 = vmatprep.subr.bf16.mxu1 %v3510_v46 }
 0x6ec   :  { %1890 = vmatpush1.bf16.msra.mxu1 %v3598_v42 }
 0x6ed   :  { %1891 = vmatprep.subr.bf16.mxu1 %v3601_v44 }
 0x6f0   :  { %1892 = vmatpush1.bf16.msra.mxu1 %v3604_v5 }
 0x6f1   :  { %1893 = vmatprep.subr.bf16.mxu1 %v3607_v56 }
 0x6f4   :  { %1894 = vmatpush1.bf16.msra.mxu1 %v3610_v60  ;;  %v1827_v60 = vrot.slane %v3620_v54, 7 }
 0x6f5   :  { %2448 = vmatprep.subr.bf16.mxu1 %v3807_v0 }
 0x78a   :  { %v1702_v55 = vpop.f32.mrb[36].mxu1  ;;  %v1743_v22 = vpop.f32.mrb[40].mxu0 }
 0x78b   :  { %v1795_v15 = vrot.slane %v1702_v55, 2  ;;  %v1704_v17 = vpop.f32.mrb[37].mxu1  ;;  %v1745_v19 = vpop.f32.mrb[41].mxu0  ;;  %v1797_v8 = vrot.slane %v1743_v22, 2 }
 0x78c   :  { %v1796_v21 = vrot.slane %v1704_v17, 2  ;;  %v1706_v23 = vpop.f32.mrb[38].mxu1  ;;  %v1747_v25 = vpop.f32.mrb[42].mxu0  ;;  %v1798_v33 = vrot.slane %v1745_v19, 2 }
 0x78d   :  { %v1803_v27 = vadd.f32 %v1795_v15, %v3201_v52  ;;  %v1707_v29 = vpop.f32.mrb[39].mxu1  ;;  %v1748_v31 = vpop.f32.mrb[43].mxu0  ;;  %v1805_v58 = vadd.f32 %v1797_v8, %v3210_v43 }
 0x78e   :  { %v1804_v61 = vadd.f32 %v1796_v21, %v3203_v53  ;;  %v1806_v34 = vadd.f32 %v1798_v33, %v3207_v36 }
 0x78f   :  { %v2230_v46 = vmul.f32 -1.442695, %v1803_v27 }
 0x790   :  { %v2231_v2 = vmul.f32 -1.442695, %v1804_v61  ;;  %v2232_v40 = vmul.f32 -1.442695, %v1806_v34 }
 0x791   :  { %2684 = vpow2.f32 %v2230_v46 }
 0x792   :  { %2686 = vpow2.f32 %v2231_v2 }
 0x793   :  { %2688 = vpow2.f32 %v2232_v40 }
 0x794   :  { %2690 = vtanh.f32 %v1805_v58 }
 0x79b   :  { %v2685_v41 = vpop.eup %2684 }
 0x79c   :  { %v2687_v62 = vpop.eup %2686  ;;  %v1810_v38 = vadd.f32 1.0, %v2685_v41 }
 0x79d   :  { %v1816_v42 = vadd.f32 1.0, %v2687_v62  ;;  %v2689_v44 = vpop.eup %2688 }
 0x79e   :  { %2692 = vrcp.f32 %v1810_v38  ;;  %v2691_v5 = vpop.eup %2690  ;;  %v1823_v1 = vadd.f32 1.0, %v2689_v44 }
 0x79f   :  { %2694 = vrcp.f32 %v1816_v42 }
 0x7a0   :  { %2696 = vrcp.f32 %v1823_v1 }
 0x7a8   :  { %v2693_v56 = vpop.eup %2692 }
 0x7a9   :  { %v2695_v37 = vpop.eup %2694  ;;  %v1830_v32 = vmul.f32 %v2693_v56, %v2691_v5 }
 0x7aa   :  { %v1829_v6 = vmul.f32 %v2695_v37, %v1827_v60  ;;  %v1784_v7 = vpop.f32.mrb[40].mxu1  ;;  %v2697_v54 = vpop.eup %2696 }
 0x7ab   :  { %v1790_v49 = vadd.f32 %v1784_v7, %v3357_v35  ;;  %v2426_v9 = vpop.f32.mrb[41].mxu1 }
 0x7ac   :  { %v3701_v10 = vadd.f32 %v1830_v32, %v1829_v6  ;;  %v1787_v4 = vpop.f32.mrb[42].mxu1 }
 0x7ad   :  { %v2064_v11 = vrot.slane %v1790_v49, 3  ;;  %v2427_v12 = vpop.f32.mrb[43].mxu1 }
 0x7ae   :  { %2698 = vtanh.f32 %v3701_v10  ;;  %v1997_v27 = vrot.slane %v3701_v10, 7 }
 0x7af   :  { %v3706_v13 = vsel %vm139_vm4, %v3625_v51, %v2064_v11 }
 0x7b8   :  { %v2699_v39 = vpop.eup %2698 }
 0x7b9   :  { %v1833_v57 = vmul.f32 %v2699_v39, %v2697_v54 }
 0x7bb   :  { %v1834_v47 = vpack.c.bf16 %v1833_v57, %v1833_v57 }
 0x7bd   :  { %v1836_v45 = vrot.slane %v1834_v47, 3 }
 0x7bf   :  { %1871 = vmatmul.mubr.bf16.vlgmr.msra.gmra.mrb[44].mxu0 %v1836_v45  ;;  %1912 = vmatmul.mubr.bf16.vlgmr.msra.gmra.mrb[44].mxu1 %v1836_v45 }
 0x7c0   :  { %2429 = vmatpush3.bf16.msra.mxu0 %v3627_v28  ;;  %2444 = vmatprep.mubr.msk.bf16.mxu0 %vm2921_vm7, %v3807_v0 }
 0x7c1   :  { %2430 = vmatprep.subr.bf16.mxu0 %v3807_v0  ;;  %2449 = vmatpush3.bf16.msra.mxu1 %v3627_v28 }
 0x7c2   :  { %2450 = vmatprep.subr.bf16.mxu1 %v3807_v0  ;;  %2464 = vmatprep.mubr.msk.bf16.mxu1 %vm2921_vm7, %v3807_v0 }
 0x7c4   :  { %2431 = vmatpush3.bf16.msra.mxu0 %v3636_v59 }
 0x7c5   :  { %2432 = vmatprep.subr.bf16.mxu0 %v3807_v0  ;;  %2451 = vmatpush3.bf16.msra.mxu1 %v3636_v59 }
 0x7c6   :  { %2452 = vmatprep.subr.bf16.mxu1 %v3807_v0 }
 0x7c8   :  { %2433 = vmatpush3.bf16.msra.mxu0 %v3642_v30 }
 0x7c9   :  { %2434 = vmatprep.subr.bf16.mxu0 %v3807_v0  ;;  %2453 = vmatpush3.bf16.msra.mxu1 %v3642_v30 }
 0x7ca   :  { %2454 = vmatprep.subr.bf16.mxu1 %v3807_v0 }
 0x7cc   :  { %2435 = vmatpush3.bf16.msra.mxu0 %v3648_v14 }
 0x7cd   :  { %2436 = vmatprep.subr.bf16.mxu0 %v3807_v0  ;;  %2455 = vmatpush3.bf16.msra.mxu1 %v3648_v14 }
 0x7ce   :  { %2456 = vmatprep.subr.bf16.mxu1 %v3807_v0 }
 0x7d0   :  { %2437 = vmatpush3.bf16.msra.mxu0 %v3654_v48 }
 0x7d1   :  { %2438 = vmatprep.subr.bf16.mxu0 %v3807_v0  ;;  %2457 = vmatpush3.bf16.msra.mxu1 %v3654_v48 }
 0x7d2   :  { %2458 = vmatprep.subr.bf16.mxu1 %v3807_v0 }
 0x7d4   :  { %2439 = vmatpush3.bf16.msra.mxu0 %v3660_v16 }
 0x7d5   :  { %2440 = vmatprep.subr.bf16.mxu0 %v3807_v0  ;;  %2459 = vmatpush3.bf16.msra.mxu1 %v3660_v16 }
 0x7d6   :  { %2460 = vmatprep.subr.bf16.mxu1 %v3807_v0 }
 0x7d8   :  { %2441 = vmatpush3.bf16.msra.mxu0 %v3666_v18 }
 0x7d9   :  { %2442 = vmatprep.subr.bf16.mxu0 %v3807_v0  ;;  %2461 = vmatpush3.bf16.msra.mxu1 %v3666_v18 }
 0x7da   :  { %2462 = vmatprep.subr.bf16.mxu1 %v3807_v0 }
 0x7dc   :  { %2443 = vmatpush3.bf16.msra.mxu0 %v3672_v20 }
 0x7dd   :  { %2463 = vmatpush3.bf16.msra.mxu1 %v3672_v20 }
 0x7df   :  { %2445 = vmatmul.mubr.bf16.vlgmr.msra.gmra.mrb[48].mxu0 %v1836_v45 }
 0x892   :  { %v1872_v35 = vpop.f32.mrb[44].mxu0  ;;  %v1913_v51 = vpop.f32.mrb[44].mxu1 }
 0x893   :  { %v1965_v50 = vrot.slane %v1872_v35, 1  ;;  %v1874_v63 = vpop.f32.mrb[45].mxu0  ;;  %v1915_v24 = vpop.f32.mrb[45].mxu1  ;;  %v1967_v55 = vrot.slane %v1913_v51, 1 }
 0x894   :  { %v1966_v26 = vrot.slane %v1874_v63, 1  ;;  %v1876_v3 = vpop.f32.mrb[46].mxu0  ;;  %v1917_v28 = vpop.f32.mrb[46].mxu1  ;;  %v1968_v18 = vrot.slane %v1915_v24, 1 }
 0x895   :  { %v1973_v59 = vadd.f32 %v1965_v50, %v3201_v52  ;;  %v1877_v30 = vpop.f32.mrb[47].mxu0  ;;  %v1918_v14 = vpop.f32.mrb[47].mxu1  ;;  %v1975_v15 = vadd.f32 %v1967_v55, %v3210_v43  ;;  %v2756_v43 = vld [vmem:[%s3796_s7] sm:$0x1]  ;;  %s2922_s7 = smov [#allocation11]  }
 0x896   :  { %v1974_v48 = vadd.f32 %v1966_v26, %v3203_v53  ;;  %v1976_v20 = vadd.f32 %v1968_v18, %v3207_v36  ;;  %s2098_s20 = sshll.u32 %s2922_s7, 4  ;;  %s2099_s20 = int_to_ptr.vmem [resolvable:$true] %s2098_s20 }
 0x897   :  { %v2233_v0 = vmul.f32 -1.442695, %v1973_v59  ;;  %s2833_s21 = scalar_lea.vmem %s2099_s20, 16  ;;  %s2837_s5 = scalar_lea.vmem %s2099_s20, 32 }
 0x898   :  { %v2234_v16 = vmul.f32 -1.442695, %v1974_v48  ;;  %v2235_v22 = vmul.f32 -1.442695, %v1976_v20  ;;  %p2834_p13 = scmp.ne.s32.totalorder %s2099_s20, %s2833_s21  ;;  %p2838_p0 = scmp.lt.s32.totalorder %s2099_s20, %s2099_s20 }
 0x899   :  { %2700 = vpow2.f32 %v2233_v0  ;;  %p2839_p1 = scmp.lt.s32.totalorder %s2837_s5, %s2833_s21 }
 0x89a   :  { %2702 = vpow2.f32 %v2234_v16 }
 0x89b   :  { %2704 = vpow2.f32 %v2235_v22  ;;  %p2840_p2 = por %p2839_p1, %p2838_p0 }
 0x89c   :  { %2706 = vtanh.f32 %v1975_v15 }
 0x89d   :  { %p2841_p3 = pnand %p2840_p2, %p2834_p13 }
 0x8a3   :  { %v2701_v17 = vpop.eup %2700 }
 0x8a4   :  { %v2703_v19 = vpop.eup %2702  ;;  %v1980_v21 = vadd.f32 1.0, %v2701_v17 }
 0x8a5   :  { %v1986_v52 = vadd.f32 1.0, %v2703_v19  ;;  %v2705_v53 = vpop.eup %2704 }
 0x8a6   :  { %2708 = vrcp.f32 %v1980_v21  ;;  %v2707_v23 = vpop.eup %2706  ;;  %v1993_v36 = vadd.f32 1.0, %v2705_v53 }
 0x8a7   :  { %2710 = vrcp.f32 %v1986_v52 }
 0x8a8   :  { %2712 = vrcp.f32 %v1993_v36 }
 0x8b0   :  { %v2709_v25 = vpop.eup %2708 }
 0x8b1   :  { %v2711_v29 = vpop.eup %2710  ;;  %v2000_v31 = vmul.f32 %v2709_v25, %v2707_v23 }
 0x8b2   :  { %v1999_v61 = vmul.f32 %v2711_v29, %v1997_v27  ;;  %v1954_v46 = vpop.f32.mrb[48].mxu0  ;;  %v2713_v62 = vpop.eup %2712 }
 0x8b3   :  { %v1960_v2 = vadd.f32 %v2756_v43, %v1954_v46  ;;  %v2446_v33 = vpop.f32.mrb[49].mxu0 }
 0x8b4   :  { %v2001_v34 = vadd.f32 %v2000_v31, %v1999_v61  ;;  %v1957_v8 = vpop.f32.mrb[50].mxu0 }
 0x8b5   :  { %v2067_v40 = vrot.slane %v1960_v2, 2  ;;  %v2447_v58 = vpop.f32.mrb[51].mxu0 }
 0x8b6   :  { %2081 = vst [vmem:[#allocation13 - $0x7] sm:$0x80] %v2001_v34  ;;  %2714 = vtanh.f32 %v2001_v34 }
 0x8b7   :  { %v2077_v41 = vsel %vm141_vm5, %v3706_v13, %v2067_v40 }
 0x8c0   :  { %v2715_v38 = vpop.eup %2714 }
 0x8c1   :  { %v2003_v42 = vmul.f32 %v2715_v38, %v2713_v62 }
 0x8c3   :  { %v2004_v44 = vpack.c.bf16 %v2003_v42, %v2003_v42  ;;  %2080 = vst [vmem:[#allocation11 - $0x7] sm:$0x80] %v2003_v42 }
 0x8c5   :  { %v2006_v5 = vshrl.u32 %v2004_v44, 16 }
 0x8c7   :  { %v2008_v56 = vrot.slane %v2006_v5, 3 }
 0x8c9   :  { %2465 = vmatmul.mubr.bf16.vlgmr.msra.gmra.mrb[48].mxu1 %v2008_v56 }
 0x8ca   :  { %2844 = shalt.err (!%p2841_p3)
}
 0x8cb   :  { %s2845_s25 = scalar_lea.hbm %s3798_s9, 16 }
 0x8cc   :  { %p2846_p4 = scmp.ne.s32.totalorder %s3798_s9, %s2845_s25  ;;  %p2849_p5 = scmp.lt.u32.totalorder %s2845_s25, %s3798_s9 }
 0x8ce   :  { %p2851_p6 = pnand %p2849_p5, %p2846_p4 }
 0x8d0   :  { %2854 = shalt.err (!%p2851_p6)
}
 0x8d1   :  { %2101 = dma.vmem_to_hbm [thread:$0]  %s2099_s20, 16, %s3798_s9, [#allocation12]  }
 0x8d2   :  { %s2923_s30 = smov [#allocation13]  }
 0x8d3   :  { %s2108_s0 = sshll.u32 %s2923_s30, 4  ;;  %s2109_s0 = int_to_ptr.vmem [resolvable:$true] %s2108_s0 }
 0x8d4   :  { %s2855_s11 = scalar_lea.vmem %s2109_s0, 16  ;;  %s2859_s12 = scalar_lea.vmem %s2109_s0, 32 }
 0x8d5   :  { %p2856_p7 = scmp.ne.s32.totalorder %s2109_s0, %s2855_s11  ;;  %p2860_p8 = scmp.lt.s32.totalorder %s2109_s0, %s2109_s0 }
 0x8d6   :  { %p2861_p9 = scmp.lt.s32.totalorder %s2859_s12, %s2855_s11 }
 0x8d8   :  { %p2862_p10 = por %p2861_p9, %p2860_p8 }
 0x8da   :  { %p2863_p11 = pnand %p2862_p10, %p2856_p7 }
 0x8dc   :  { %2866 = shalt.err (!%p2863_p11)
}
 0x8dd   :  { %s2867_s15 = scalar_lea.hbm %s3799_s10, 16 }
 0x8de   :  { %p2868_p12 = scmp.ne.s32.totalorder %s3799_s10, %s2867_s15  ;;  %p2871_p13 = scmp.lt.u32.totalorder %s2867_s15, %s3799_s10 }
 0x8e0   :  { %p2873_p0 = pnand %p2871_p13, %p2868_p12 }
 0x8e2   :  { %2876 = shalt.err (!%p2873_p0)
}
 0x8e3   :  { %2111 = dma.vmem_to_hbm [thread:$0]  %s2109_s0, 16, %s3799_s10, [#allocation12]  }
 0x8e4   :  { %s2924_s1 = smov [#allocation10]  }
 0x8e5   :  { %s2088_s17 = sshll.u32 %s2924_s1, 4  ;;  %s2089_s17 = int_to_ptr.vmem [resolvable:$true] %s2088_s17 }
 0x8e6   :  { %s2877_s19 = scalar_lea.vmem %s2089_s17, 128  ;;  %p2882_p2 = scmp.lt.s32.totalorder %s2089_s17, %s2089_s17 }
 0x8e7   :  { %p2878_p1 = scmp.ne.s32.totalorder %s2089_s17, %s2877_s19  ;;  %p2883_p3 = scmp.lt.s32.totalorder %s2877_s19, %s2877_s19 }
 0x8e9   :  { %p2884_p4 = por %p2883_p3, %p2882_p2 }
 0x8eb   :  { %p2885_p5 = pnand %p2884_p4, %p2878_p1 }
 0x99c   :  { %v2044_v60 = vpop.f32.mrb[48].mxu1 }
 0x99d   :  { %v2050_v37 = vadd.f32 %v2756_v43, %v2044_v60  ;;  %v2466_v32 = vpop.f32.mrb[49].mxu1 }
 0x99e   :  { %v2047_v1 = vpop.f32.mrb[50].mxu1 }
 0x99f   :  { %v2070_v6 = vrot.slane %v2050_v37, 1  ;;  %v2467_v7 = vpop.f32.mrb[51].mxu1 }
 0x9a1   :  { %v2078_v49 = vsel %vm143_vm6, %v2077_v41, %v2070_v6 }
 0x9a2   :  { %2079 = vst [vmem:[#allocation10] sm:$0xff] %v2078_v49 }
 0x9a3   :  { %2888 = shalt.err (!%p2885_p5)
}
 0x9a4   :  { %s2889_s20 = scalar_lea.hbm %s3797_s8, 128 }
 0x9a5   :  { %p2890_p6 = scmp.ne.s32.totalorder %s3797_s8, %s2889_s20  ;;  %p2893_p7 = scmp.lt.u32.totalorder %s2889_s20, %s3797_s8 }
 0x9a7   :  { %p2895_p8 = pnand %p2893_p7, %p2890_p6 }
 0x9a9   :  { %2898 = shalt.err (!%p2895_p8)
}
 0x9aa   :  { %2091 = dma.vmem_to_hbm [thread:$0]  %s2089_s17, 128, %s3797_s8, [#allocation6]  }
 0x9ab   :  { %2905 = dma.done.wait [#allocation6], 128  }
 0x9ac   :  { %2906 = vsyncadd [#allocation6], 4294967168 }
 0x9ad   :  { %2907 = dma.done.wait [#allocation12], 32  }
 0x9ae   :  { %2908 = vsyncadd [#allocation12], 4294967264 }
 0x9af   :  { %2121 = vsyncpa [#allocation5], 1 }
 0x9b0   :  { %2122 = vsyncpa [#allocation8], 1 }
 0x9b1   :  { %2123 = vsyncpa [#allocation6], 1 }
 0x9b2   :  { %2124 = vsyncpa [#allocation12], 1 }

</bundles_post_ra>
